<compile_context>
chip_gen: v6e
topology: v6e:2x2x1
jax: 0.10.0
libtpu: 0.0.40
codegen_flags: <defaults>
</compile_context>

<pallas_src>
import functools

import jax
import jax.numpy as jnp
from jax.experimental import pallas as pl
from jax.experimental.pallas import tpu as pltpu

# ---- mini-BERT hyperparameters (small, consistent with a BERT-style AutoModel) ----
VOCAB = 100
MAX_POS = 64
TYPE_VOCAB = 2
B, S, H = 2, 8, 32
N_LAYERS = 2
N_HEADS = 2
D_HEAD = H // N_HEADS
I_FF = 64
LN_EPS = 1e-12          # BERT default
OUT_PAD = 128           # lane-dense pooler output width
PVEC_W = max(3 * H, I_FF)   # packed per-layer vector width (96)


def _layer_norm(x, gamma, beta):
    # single-pass statistics: var = E[x^2] - mean^2 (kept in f32)
    mean = jnp.mean(x, axis=-1, keepdims=True)
    mean_sq = jnp.mean(x * x, axis=-1, keepdims=True)
    var = mean_sq - mean * mean
    return (x - mean) * jax.lax.rsqrt(var + LN_EPS) * gamma + beta


def _softmax(x):
    m = jnp.max(x, axis=-1, keepdims=True)
    e = jnp.exp(x - m)
    return e * pl.reciprocal(jnp.sum(e, axis=-1, keepdims=True), approx=True)


def encoder_kernel(n_layers, n_heads,
                   emb_ref, mask_ref, gvec_ref,
                   wqkv_ref, wo_ref, w1_ref, w2_ref,
                   lvec_ref, wp_ref, out_ref):
    seq = emb_ref.shape[1]
    hidden = emb_ref.shape[2]
    iff = w1_ref.shape[2]
    d_head = hidden // n_heads
    scale = 1.0 / float(d_head) ** 0.5

    mask_add = mask_ref[...]        # (1, 1, S) additive mask (0 / -10000)
    gv = gvec_ref[...]              # (3, 128): emb-LN gamma/beta, pooler bias

    def split_heads(t):             # (S, H) -> (n_heads, S, d_head), static slices
        return jnp.stack(
            [t[:, h * d_head:(h + 1) * d_head] for h in range(n_heads)], axis=0)

    # Embedding LayerNorm — batch block is 1, so x is a plain 2-D (S, H) f32 tile
    x = _layer_norm(emb_ref[0], gv[0:1, :hidden], gv[1:2, :hidden])

    for l in range(n_layers):       # static loop; weights indexed with Python ints
        lv = lvec_ref[l]            # (8, PVEC_W) packed per-layer 1-D params

        # Fused QKV: one bf16 (S,H)@(H,3H) matmul with f32 accumulation
        qkv = jnp.dot(x.astype(jnp.bfloat16), wqkv_ref[l],
                      preferred_element_type=jnp.float32) + lv[0:1, :3 * hidden]

        qh = split_heads(qkv[:, 0 * hidden:1 * hidden])   # (nh, S, dh)
        kh = split_heads(qkv[:, 1 * hidden:2 * hidden])
        vh = split_heads(qkv[:, 2 * hidden:3 * hidden])

        # All heads at once: one batched score einsum, one softmax, one ctx einsum
        scores = jnp.einsum('hqd,hkd->hqk', qh, kh,
                            preferred_element_type=jnp.float32) * scale
        probs = _softmax(scores + mask_add)               # (nh, S, S) f32
        ctx3 = jnp.einsum('hqk,hkd->hqd', probs, vh,
                          preferred_element_type=jnp.float32)
        ctx = jnp.concatenate([ctx3[h] for h in range(n_heads)], axis=-1)  # (S, H)

        # Single fused output projection: concat(heads) @ Wo
        attn = jnp.dot(ctx.astype(jnp.bfloat16), wo_ref[l],
                       preferred_element_type=jnp.float32) + lv[2:3, :hidden]
        x = _layer_norm(x + attn, lv[3:4, :hidden], lv[4:5, :hidden])

        # Feed-forward
        hdn = jnp.dot(x.astype(jnp.bfloat16), w1_ref[l],
                      preferred_element_type=jnp.float32) + lv[1:2, :iff]
        # TODO(synk): HF BERT "gelu" is exact erf-GELU; tanh approximation used for Mosaic-safe lowering.
        hdn = jax.nn.gelu(hdn, approximate=True)
        ffn = jnp.dot(hdn.astype(jnp.bfloat16), w2_ref[l],
                      preferred_element_type=jnp.float32) + lv[7:8, :hidden]
        x = _layer_norm(x + ffn, lv[5:6, :hidden], lv[6:7, :hidden])

    # Pooler == outputs[1] of a HF BERT-style model: tanh(CLS @ Wp + bp)
    # Wp / bp are zero-padded to 128 lanes so the final store is lane-dense.
    cls = x[0:1, :]                                        # (1, H)
    pooled = jnp.tanh(jnp.dot(cls.astype(jnp.bfloat16), wp_ref[...],
                              preferred_element_type=jnp.float32) + gv[2:3, :])
    out_ref[0] = pooled.astype(out_ref.dtype)              # (1, 128)


def init_params(key):
    ks = jax.random.split(key, 13)
    def n(k, shape, s=0.02):
        return (s * jax.random.normal(k, shape)).astype(jnp.float32)

    # Packed per-layer 1-D params (f32), rows:
    #   0: bqkv(3H) | 1: b1(I_FF) | 2: bo | 3: ln1_g | 4: ln1_b | 5: ln2_g | 6: ln2_b | 7: b2
    lvec = jnp.zeros((N_LAYERS, 8, PVEC_W), jnp.float32)
    lvec = lvec.at[:, 0, :3 * H].set(n(ks[0], (N_LAYERS, 3 * H)))
    lvec = lvec.at[:, 1, :I_FF].set(n(ks[1], (N_LAYERS, I_FF)))
    lvec = lvec.at[:, 2, :H].set(n(ks[2], (N_LAYERS, H)))
    lvec = lvec.at[:, 3, :H].set(1.0)                      # ln1 gamma
    lvec = lvec.at[:, 5, :H].set(1.0)                      # ln2 gamma
    lvec = lvec.at[:, 7, :H].set(n(ks[3], (N_LAYERS, H)))  # b2

    # Global small params: row 0 emb-LN gamma, row 1 emb-LN beta, row 2 pooler bias
    gvec = jnp.zeros((3, OUT_PAD), jnp.float32)
    gvec = gvec.at[0, :H].set(1.0)
    gvec = gvec.at[2, :H].set(n(ks[4], (H,)))

    # Pooler weight zero-padded to 128 output lanes (lane-dense store, tanh(0)=0)
    wp = jnp.zeros((H, OUT_PAD), jnp.float32).at[:, :H].set(n(ks[5], (H, H)))

    params = dict(
        word_emb=n(ks[6], (VOCAB, H)),
        pos_emb=n(ks[7], (MAX_POS, H)),
        type_emb=n(ks[8], (TYPE_VOCAB, H)),
        # MXU-path weights stored in bf16 (f32 accumulation in-kernel)
        wqkv=n(ks[9], (N_LAYERS, H, 3 * H)).astype(jnp.bfloat16),
        wo=n(ks[10], (N_LAYERS, H, H)).astype(jnp.bfloat16),
        w1=n(ks[11], (N_LAYERS, H, I_FF)).astype(jnp.bfloat16),
        w2=n(ks[12], (N_LAYERS, I_FF, H)).astype(jnp.bfloat16),
        wp=wp.astype(jnp.bfloat16),
        lvec=lvec,
        gvec=gvec,
    )
    return params


def encoder_forward(params, input_ids, attention_mask=None, token_type_ids=None):
    """Returns pooled_output (B, H), matching Encoder.forward semantics."""
    b, s = input_ids.shape
    if attention_mask is None:
        attention_mask = jnp.ones((b, s), jnp.float32)
    if token_type_ids is None:
        token_type_ids = jnp.zeros((b, s), jnp.int32)

    pos = jnp.arange(s)
    emb = (params['word_emb'][input_ids]
           + params['pos_emb'][pos][None, :, :]
           + params['type_emb'][token_type_ids]).astype(jnp.float32)   # (B, S, H)
    mask_add = ((1.0 - attention_mask.astype(jnp.float32))[:, None, :]
                * -10000.0)                                            # (B, 1, S)

    kernel = functools.partial(encoder_kernel, N_LAYERS, N_HEADS)
    out = pl.pallas_call(
        kernel,
        grid=(b,),                       # parallel batch axis (uses 2nd TC on v7x)
        out_shape=jax.ShapeDtypeStruct((b, 1, OUT_PAD), jnp.float32),
        in_specs=[
            pl.BlockSpec((1, s, H), lambda i: (i, 0, 0)),              # emb
            pl.BlockSpec((1, 1, s), lambda i: (i, 0, 0)),              # additive mask
            pl.BlockSpec((3, OUT_PAD), lambda i: (0, 0)),              # gvec
            pl.BlockSpec((N_LAYERS, H, 3 * H), lambda i: (0, 0, 0)),   # wqkv (bf16)
            pl.BlockSpec((N_LAYERS, H, H), lambda i: (0, 0, 0)),       # wo   (bf16)
            pl.BlockSpec((N_LAYERS, H, I_FF), lambda i: (0, 0, 0)),    # w1   (bf16)
            pl.BlockSpec((N_LAYERS, I_FF, H), lambda i: (0, 0, 0)),    # w2   (bf16)
            pl.BlockSpec((N_LAYERS, 8, PVEC_W), lambda i: (0, 0, 0)),  # lvec
            pl.BlockSpec((H, OUT_PAD), lambda i: (0, 0)),              # wp   (bf16)
        ],
        out_specs=pl.BlockSpec((1, 1, OUT_PAD), lambda i: (i, 0, 0)),
        compiler_params=pltpu.CompilerParams(
            dimension_semantics=("parallel",)),
    )(emb, mask_add,
      params['gvec'], params['wqkv'], params['wo'],
      params['w1'], params['w2'], params['lvec'], params['wp'])

    return out[:, 0, :H]                 # strip lane padding -> (B, H)


if __name__ == "__main__":
    key = jax.random.PRNGKey(0)
    pkey, ikey = jax.random.split(key)
    params = init_params(pkey)

    input_ids = jax.random.randint(ikey, (B, S), 0, VOCAB, dtype=jnp.int32)
    # second sequence has its last two tokens masked out (padding)
    attention_mask = jnp.array([[1] * S, [1] * (S - 2) + [0, 0]], jnp.float32)
    token_type_ids = jnp.zeros((B, S), jnp.int32)

    pooled = encoder_forward(params, input_ids, attention_mask, token_type_ids)
    pooled = jax.block_until_ready(pooled)
    assert pooled.shape == (B, H) and pooled.dtype == jnp.float32
    print("KERNEL_OK")
</pallas_src>

<mosaic_0001>
module attributes {stable_mosaic.version = 11 : i64} {
  func.func @encoder_kernel(%arg0: i32, %arg1: memref<1x8x32xf32, #tpu.memory_space<vmem>>, %arg2: memref<1x1x8xf32, #tpu.memory_space<vmem>>, %arg3: memref<3x128xf32, #tpu.memory_space<vmem>>, %arg4: memref<2x32x96xbf16, #tpu.memory_space<vmem>>, %arg5: memref<2x32x32xbf16, #tpu.memory_space<vmem>>, %arg6: memref<2x32x64xbf16, #tpu.memory_space<vmem>>, %arg7: memref<2x64x32xbf16, #tpu.memory_space<vmem>>, %arg8: memref<2x8x96xf32, #tpu.memory_space<vmem>>, %arg9: memref<32x128xbf16, #tpu.memory_space<vmem>>, %arg10: memref<1x1x128xf32, #tpu.memory_space<vmem>>) attributes {dimension_semantics = [#tpu.dimension_semantics<parallel>], iteration_bounds = array<i64: 2>, scalar_prefetch = 0 : i64, scratch_operands = 0 : i64, tpu.core_type = #tpu.core_type<tc>, window_params = [{transform_indices = @transform_0, window_bounds = array<i64: 1, 8, 32>}, {transform_indices = @transform_1, window_bounds = array<i64: 1, 1, 8>}, {pipeline_mode = #tpu.pipeline_mode<synchronous>, transform_indices = @transform_2, window_bounds = array<i64: 3, 128>}, {pipeline_mode = #tpu.pipeline_mode<synchronous>, transform_indices = @transform_3, window_bounds = array<i64: 2, 32, 96>}, {pipeline_mode = #tpu.pipeline_mode<synchronous>, transform_indices = @transform_4, window_bounds = array<i64: 2, 32, 32>}, {pipeline_mode = #tpu.pipeline_mode<synchronous>, transform_indices = @transform_5, window_bounds = array<i64: 2, 32, 64>}, {pipeline_mode = #tpu.pipeline_mode<synchronous>, transform_indices = @transform_6, window_bounds = array<i64: 2, 64, 32>}, {pipeline_mode = #tpu.pipeline_mode<synchronous>, transform_indices = @transform_7, window_bounds = array<i64: 2, 8, 96>}, {pipeline_mode = #tpu.pipeline_mode<synchronous>, transform_indices = @transform_8, window_bounds = array<i64: 32, 128>}, {transform_indices = @transform_9, window_bounds = array<i64: 1, 1, 128>}]} {
    %c0 = arith.constant 0 : index
    %c0_0 = arith.constant 0 : index
    %c0_1 = arith.constant 0 : index
    %0 = vector.load %arg2[%c0, %c0_0, %c0_1] : memref<1x1x8xf32, #tpu.memory_space<vmem>>, vector<1x1x8xf32>
    %c0_2 = arith.constant 0 : index
    %c0_3 = arith.constant 0 : index
    %1 = vector.load %arg3[%c0_2, %c0_3] : memref<3x128xf32, #tpu.memory_space<vmem>>, vector<3x128xf32>
    %c0_4 = arith.constant 0 : index
    %c0_5 = arith.constant 0 : index
    %c0_6 = arith.constant 0 : index
    %2 = vector.load %arg1[%c0_4, %c0_5, %c0_6] : memref<1x8x32xf32, #tpu.memory_space<vmem>>, vector<1x8x32xf32>
    %3 = vector.shape_cast %2 : vector<1x8x32xf32> to vector<8x32xf32>
    %4 = vector.extract_strided_slice %1 {offsets = [0, 0], sizes = [1, 32], strides = [1, 1]} : vector<3x128xf32> to vector<1x32xf32>
    %5 = vector.extract_strided_slice %1 {offsets = [1, 0], sizes = [1, 32], strides = [1, 1]} : vector<3x128xf32> to vector<1x32xf32>
    %cst = arith.constant dense<0.000000e+00> : vector<8xf32>
    %6 = vector.multi_reduction <add>, %3, %cst [1] : vector<8x32xf32> to vector<8xf32>
    %7 = vector.shape_cast %6 : vector<8xf32> to vector<8x1xf32>
    %cst_7 = arith.constant 3.200000e+01 : f32
    %8 = vector.broadcast %cst_7 : f32 to vector<8x1xf32>
    %9 = arith.divf %7, %8 : vector<8x1xf32>
    %10 = arith.mulf %3, %3 : vector<8x32xf32>
    %cst_8 = arith.constant dense<0.000000e+00> : vector<8xf32>
    %11 = vector.multi_reduction <add>, %10, %cst_8 [1] : vector<8x32xf32> to vector<8xf32>
    %12 = vector.shape_cast %11 : vector<8xf32> to vector<8x1xf32>
    %cst_9 = arith.constant 3.200000e+01 : f32
    %13 = vector.broadcast %cst_9 : f32 to vector<8x1xf32>
    %14 = arith.divf %12, %13 : vector<8x1xf32>
    %15 = arith.mulf %9, %9 : vector<8x1xf32>
    %16 = arith.subf %14, %15 : vector<8x1xf32>
    %17 = vector.broadcast %9 : vector<8x1xf32> to vector<8x32xf32>
    %18 = arith.subf %3, %17 : vector<8x32xf32>
    %cst_10 = arith.constant 9.99999996E-13 : f32
    %19 = vector.broadcast %cst_10 : f32 to vector<8x1xf32>
    %20 = arith.addf %16, %19 : vector<8x1xf32>
    %21 = math.rsqrt %20 : vector<8x1xf32>
    %22 = vector.broadcast %21 : vector<8x1xf32> to vector<8x32xf32>
    %23 = arith.mulf %18, %22 : vector<8x32xf32>
    %24 = vector.broadcast %4 : vector<1x32xf32> to vector<8x32xf32>
    %25 = arith.mulf %23, %24 : vector<8x32xf32>
    %26 = vector.broadcast %5 : vector<1x32xf32> to vector<8x32xf32>
    %27 = arith.addf %25, %26 : vector<8x32xf32>
    %c0_11 = arith.constant 0 : index
    %c0_12 = arith.constant 0 : index
    %c0_13 = arith.constant 0 : index
    %28 = vector.load %arg8[%c0_11, %c0_12, %c0_13] : memref<2x8x96xf32, #tpu.memory_space<vmem>>, vector<1x8x96xf32>
    %29 = vector.shape_cast %28 : vector<1x8x96xf32> to vector<8x96xf32>
    %30 = arith.truncf %27 : vector<8x32xf32> to vector<8x32xbf16>
    %c0_14 = arith.constant 0 : index
    %c0_15 = arith.constant 0 : index
    %c0_16 = arith.constant 0 : index
    %31 = vector.load %arg4[%c0_14, %c0_15, %c0_16] : memref<2x32x96xbf16, #tpu.memory_space<vmem>>, vector<1x32x96xbf16>
    %32 = vector.shape_cast %31 : vector<1x32x96xbf16> to vector<32x96xbf16>
    %cst_17 = arith.constant dense<0.000000e+00> : vector<8x96xf32>
    %33 = tpu.matmul %30, %32, %cst_17 {dimension_numbers = #tpu.dot_dimension_numbers<[1], [0], [0], [1], [0, 0, 1, 1], [], []>} : vector<8x32xbf16>, vector<32x96xbf16>, vector<8x96xf32> -> vector<8x96xf32>
    %34 = vector.extract_strided_slice %29 {offsets = [0, 0], sizes = [1, 96], strides = [1, 1]} : vector<8x96xf32> to vector<1x96xf32>
    %35 = vector.broadcast %34 : vector<1x96xf32> to vector<8x96xf32>
    %36 = arith.addf %33, %35 : vector<8x96xf32>
    %37 = vector.extract_strided_slice %36 {offsets = [0, 0], sizes = [8, 32], strides = [1, 1]} : vector<8x96xf32> to vector<8x32xf32>
    %38 = vector.extract_strided_slice %37 {offsets = [0, 0], sizes = [8, 16], strides = [1, 1]} : vector<8x32xf32> to vector<8x16xf32>
    %39 = vector.extract_strided_slice %37 {offsets = [0, 16], sizes = [8, 16], strides = [1, 1]} : vector<8x32xf32> to vector<8x16xf32>
    %40 = vector.shape_cast %38 : vector<8x16xf32> to vector<1x8x16xf32>
    %41 = vector.shape_cast %39 : vector<8x16xf32> to vector<1x8x16xf32>
    %42 = tpu.concatenate %40, %41 in 0 : vector<1x8x16xf32>, vector<1x8x16xf32> -> vector<2x8x16xf32>
    %43 = vector.extract_strided_slice %36 {offsets = [0, 32], sizes = [8, 32], strides = [1, 1]} : vector<8x96xf32> to vector<8x32xf32>
    %44 = vector.extract_strided_slice %43 {offsets = [0, 0], sizes = [8, 16], strides = [1, 1]} : vector<8x32xf32> to vector<8x16xf32>
    %45 = vector.extract_strided_slice %43 {offsets = [0, 16], sizes = [8, 16], strides = [1, 1]} : vector<8x32xf32> to vector<8x16xf32>
    %46 = vector.shape_cast %44 : vector<8x16xf32> to vector<1x8x16xf32>
    %47 = vector.shape_cast %45 : vector<8x16xf32> to vector<1x8x16xf32>
    %48 = tpu.concatenate %46, %47 in 0 : vector<1x8x16xf32>, vector<1x8x16xf32> -> vector<2x8x16xf32>
    %49 = vector.extract_strided_slice %36 {offsets = [0, 64], sizes = [8, 32], strides = [1, 1]} : vector<8x96xf32> to vector<8x32xf32>
    %50 = vector.extract_strided_slice %49 {offsets = [0, 0], sizes = [8, 16], strides = [1, 1]} : vector<8x32xf32> to vector<8x16xf32>
    %51 = vector.extract_strided_slice %49 {offsets = [0, 16], sizes = [8, 16], strides = [1, 1]} : vector<8x32xf32> to vector<8x16xf32>
    %52 = vector.shape_cast %50 : vector<8x16xf32> to vector<1x8x16xf32>
    %53 = vector.shape_cast %51 : vector<8x16xf32> to vector<1x8x16xf32>
    %54 = tpu.concatenate %52, %53 in 0 : vector<1x8x16xf32>, vector<1x8x16xf32> -> vector<2x8x16xf32>
    "tpu.trace_start"() <{level = 10 : i32, message = "hqd,hkd->hqk"}> : () -> ()
    %cst_18 = arith.constant dense<0.000000e+00> : vector<2x8x8xf32>
    %55 = tpu.matmul %42, %48, %cst_18 {dimension_numbers = #tpu.dot_dimension_numbers<[2], [2], [1], [1], [0, 0, 0, 1, 1, 1], [0], [0]>} : vector<2x8x16xf32>, vector<2x8x16xf32>, vector<2x8x8xf32> -> vector<2x8x8xf32>
    "tpu.trace_stop"() : () -> ()
    %cst_19 = arith.constant 2.500000e-01 : f32
    %56 = vector.broadcast %cst_19 : f32 to vector<2x8x8xf32>
    %57 = arith.mulf %55, %56 : vector<2x8x8xf32>
    %58 = vector.broadcast %0 : vector<1x1x8xf32> to vector<2x8x8xf32>
    %59 = arith.addf %57, %58 : vector<2x8x8xf32>
    %cst_20 = arith.constant dense<0xFF800000> : vector<2x8xf32>
    %60 = vector.multi_reduction <maximumf>, %59, %cst_20 [2] : vector<2x8x8xf32> to vector<2x8xf32>
    %61 = vector.shape_cast %60 : vector<2x8xf32> to vector<2x8x1xf32>
    %62 = vector.broadcast %61 : vector<2x8x1xf32> to vector<2x8x8xf32>
    %63 = arith.subf %59, %62 : vector<2x8x8xf32>
    %64 = math.exp %63 : vector<2x8x8xf32>
    %cst_21 = arith.constant dense<0.000000e+00> : vector<2x8xf32>
    %65 = vector.multi_reduction <add>, %64, %cst_21 [2] : vector<2x8x8xf32> to vector<2x8xf32>
    %66 = vector.shape_cast %65 : vector<2x8xf32> to vector<2x8x1xf32>
    %67 = tpu.reciprocal %66 {approx = true} : vector<2x8x1xf32> -> vector<2x8x1xf32>
    %68 = vector.broadcast %67 : vector<2x8x1xf32> to vector<2x8x8xf32>
    %69 = arith.mulf %64, %68 : vector<2x8x8xf32>
    "tpu.trace_start"() <{level = 10 : i32, message = "hqk,hkd->hqd"}> : () -> ()
    %cst_22 = arith.constant dense<0.000000e+00> : vector<2x8x16xf32>
    %70 = tpu.matmul %69, %54, %cst_22 {dimension_numbers = #tpu.dot_dimension_numbers<[2], [1], [1], [2], [0, 0, 0, 1, 1, 2], [0], [0]>} : vector<2x8x8xf32>, vector<2x8x16xf32>, vector<2x8x16xf32> -> vector<2x8x16xf32>
    "tpu.trace_stop"() : () -> ()
    %71 = vector.extract_strided_slice %70 {offsets = [0, 0, 0], sizes = [1, 8, 16], strides = [1, 1, 1]} : vector<2x8x16xf32> to vector<1x8x16xf32>
    %72 = vector.shape_cast %71 : vector<1x8x16xf32> to vector<8x16xf32>
    %73 = vector.extract_strided_slice %70 {offsets = [1, 0, 0], sizes = [1, 8, 16], strides = [1, 1, 1]} : vector<2x8x16xf32> to vector<1x8x16xf32>
    %74 = vector.shape_cast %73 : vector<1x8x16xf32> to vector<8x16xf32>
    %75 = tpu.concatenate %72, %74 in 1 : vector<8x16xf32>, vector<8x16xf32> -> vector<8x32xf32>
    %76 = arith.truncf %75 : vector<8x32xf32> to vector<8x32xbf16>
    %c0_23 = arith.constant 0 : index
    %c0_24 = arith.constant 0 : index
    %c0_25 = arith.constant 0 : index
    %77 = vector.load %arg5[%c0_23, %c0_24, %c0_25] : memref<2x32x32xbf16, #tpu.memory_space<vmem>>, vector<1x32x32xbf16>
    %78 = vector.shape_cast %77 : vector<1x32x32xbf16> to vector<32x32xbf16>
    %cst_26 = arith.constant dense<0.000000e+00> : vector<8x32xf32>
    %79 = tpu.matmul %76, %78, %cst_26 {dimension_numbers = #tpu.dot_dimension_numbers<[1], [0], [0], [1], [0, 0, 1, 1], [], []>} : vector<8x32xbf16>, vector<32x32xbf16>, vector<8x32xf32> -> vector<8x32xf32>
    %80 = vector.extract_strided_slice %29 {offsets = [2, 0], sizes = [1, 32], strides = [1, 1]} : vector<8x96xf32> to vector<1x32xf32>
    %81 = vector.broadcast %80 : vector<1x32xf32> to vector<8x32xf32>
    %82 = arith.addf %79, %81 : vector<8x32xf32>
    %83 = arith.addf %27, %82 : vector<8x32xf32>
    %84 = vector.extract_strided_slice %29 {offsets = [3, 0], sizes = [1, 32], strides = [1, 1]} : vector<8x96xf32> to vector<1x32xf32>
    %85 = vector.extract_strided_slice %29 {offsets = [4, 0], sizes = [1, 32], strides = [1, 1]} : vector<8x96xf32> to vector<1x32xf32>
    %cst_27 = arith.constant dense<0.000000e+00> : vector<8xf32>
    %86 = vector.multi_reduction <add>, %83, %cst_27 [1] : vector<8x32xf32> to vector<8xf32>
    %87 = vector.shape_cast %86 : vector<8xf32> to vector<8x1xf32>
    %cst_28 = arith.constant 3.200000e+01 : f32
    %88 = vector.broadcast %cst_28 : f32 to vector<8x1xf32>
    %89 = arith.divf %87, %88 : vector<8x1xf32>
    %90 = arith.mulf %83, %83 : vector<8x32xf32>
    %cst_29 = arith.constant dense<0.000000e+00> : vector<8xf32>
    %91 = vector.multi_reduction <add>, %90, %cst_29 [1] : vector<8x32xf32> to vector<8xf32>
    %92 = vector.shape_cast %91 : vector<8xf32> to vector<8x1xf32>
    %cst_30 = arith.constant 3.200000e+01 : f32
    %93 = vector.broadcast %cst_30 : f32 to vector<8x1xf32>
    %94 = arith.divf %92, %93 : vector<8x1xf32>
    %95 = arith.mulf %89, %89 : vector<8x1xf32>
    %96 = arith.subf %94, %95 : vector<8x1xf32>
    %97 = vector.broadcast %89 : vector<8x1xf32> to vector<8x32xf32>
    %98 = arith.subf %83, %97 : vector<8x32xf32>
    %cst_31 = arith.constant 9.99999996E-13 : f32
    %99 = vector.broadcast %cst_31 : f32 to vector<8x1xf32>
    %100 = arith.addf %96, %99 : vector<8x1xf32>
    %101 = math.rsqrt %100 : vector<8x1xf32>
    %102 = vector.broadcast %101 : vector<8x1xf32> to vector<8x32xf32>
    %103 = arith.mulf %98, %102 : vector<8x32xf32>
    %104 = vector.broadcast %84 : vector<1x32xf32> to vector<8x32xf32>
    %105 = arith.mulf %103, %104 : vector<8x32xf32>
    %106 = vector.broadcast %85 : vector<1x32xf32> to vector<8x32xf32>
    %107 = arith.addf %105, %106 : vector<8x32xf32>
    %108 = arith.truncf %107 : vector<8x32xf32> to vector<8x32xbf16>
    %c0_32 = arith.constant 0 : index
    %c0_33 = arith.constant 0 : index
    %c0_34 = arith.constant 0 : index
    %109 = vector.load %arg6[%c0_32, %c0_33, %c0_34] : memref<2x32x64xbf16, #tpu.memory_space<vmem>>, vector<1x32x64xbf16>
    %110 = vector.shape_cast %109 : vector<1x32x64xbf16> to vector<32x64xbf16>
    %cst_35 = arith.constant dense<0.000000e+00> : vector<8x64xf32>
    %111 = tpu.matmul %108, %110, %cst_35 {dimension_numbers = #tpu.dot_dimension_numbers<[1], [0], [0], [1], [0, 0, 1, 1], [], []>} : vector<8x32xbf16>, vector<32x64xbf16>, vector<8x64xf32> -> vector<8x64xf32>
    %112 = vector.extract_strided_slice %29 {offsets = [1, 0], sizes = [1, 64], strides = [1, 1]} : vector<8x96xf32> to vector<1x64xf32>
    %113 = vector.broadcast %112 : vector<1x64xf32> to vector<8x64xf32>
    %114 = arith.addf %111, %113 : vector<8x64xf32>
    %115 = arith.mulf %114, %114 : vector<8x64xf32>
    %116 = arith.mulf %114, %115 : vector<8x64xf32>
    %cst_36 = arith.constant 4.471500e-02 : f32
    %117 = vector.broadcast %cst_36 : f32 to vector<8x64xf32>
    %118 = arith.mulf %117, %116 : vector<8x64xf32>
    %119 = arith.addf %114, %118 : vector<8x64xf32>
    %cst_37 = arith.constant 0.797884583 : f32
    %120 = vector.broadcast %cst_37 : f32 to vector<8x64xf32>
    %121 = arith.mulf %120, %119 : vector<8x64xf32>
    %122 = math.tanh %121 : vector<8x64xf32>
    %cst_38 = arith.constant 1.000000e+00 : f32
    %123 = vector.broadcast %cst_38 : f32 to vector<8x64xf32>
    %124 = arith.addf %123, %122 : vector<8x64xf32>
    %cst_39 = arith.constant 5.000000e-01 : f32
    %125 = vector.broadcast %cst_39 : f32 to vector<8x64xf32>
    %126 = arith.mulf %125, %124 : vector<8x64xf32>
    %127 = arith.mulf %114, %126 : vector<8x64xf32>
    %128 = arith.truncf %127 : vector<8x64xf32> to vector<8x64xbf16>
    %c0_40 = arith.constant 0 : index
    %c0_41 = arith.constant 0 : index
    %c0_42 = arith.constant 0 : index
    %129 = vector.load %arg7[%c0_40, %c0_41, %c0_42] : memref<2x64x32xbf16, #tpu.memory_space<vmem>>, vector<1x64x32xbf16>
    %130 = vector.shape_cast %129 : vector<1x64x32xbf16> to vector<64x32xbf16>
    %cst_43 = arith.constant dense<0.000000e+00> : vector<8x32xf32>
    %131 = tpu.matmul %128, %130, %cst_43 {dimension_numbers = #tpu.dot_dimension_numbers<[1], [0], [0], [1], [0, 0, 1, 1], [], []>} : vector<8x64xbf16>, vector<64x32xbf16>, vector<8x32xf32> -> vector<8x32xf32>
    %132 = vector.extract_strided_slice %29 {offsets = [7, 0], sizes = [1, 32], strides = [1, 1]} : vector<8x96xf32> to vector<1x32xf32>
    %133 = vector.broadcast %132 : vector<1x32xf32> to vector<8x32xf32>
    %134 = arith.addf %131, %133 : vector<8x32xf32>
    %135 = arith.addf %107, %134 : vector<8x32xf32>
    %136 = vector.extract_strided_slice %29 {offsets = [5, 0], sizes = [1, 32], strides = [1, 1]} : vector<8x96xf32> to vector<1x32xf32>
    %137 = vector.extract_strided_slice %29 {offsets = [6, 0], sizes = [1, 32], strides = [1, 1]} : vector<8x96xf32> to vector<1x32xf32>
    %cst_44 = arith.constant dense<0.000000e+00> : vector<8xf32>
    %138 = vector.multi_reduction <add>, %135, %cst_44 [1] : vector<8x32xf32> to vector<8xf32>
    %139 = vector.shape_cast %138 : vector<8xf32> to vector<8x1xf32>
    %cst_45 = arith.constant 3.200000e+01 : f32
    %140 = vector.broadcast %cst_45 : f32 to vector<8x1xf32>
    %141 = arith.divf %139, %140 : vector<8x1xf32>
    %142 = arith.mulf %135, %135 : vector<8x32xf32>
    %cst_46 = arith.constant dense<0.000000e+00> : vector<8xf32>
    %143 = vector.multi_reduction <add>, %142, %cst_46 [1] : vector<8x32xf32> to vector<8xf32>
    %144 = vector.shape_cast %143 : vector<8xf32> to vector<8x1xf32>
    %cst_47 = arith.constant 3.200000e+01 : f32
    %145 = vector.broadcast %cst_47 : f32 to vector<8x1xf32>
    %146 = arith.divf %144, %145 : vector<8x1xf32>
    %147 = arith.mulf %141, %141 : vector<8x1xf32>
    %148 = arith.subf %146, %147 : vector<8x1xf32>
    %149 = vector.broadcast %141 : vector<8x1xf32> to vector<8x32xf32>
    %150 = arith.subf %135, %149 : vector<8x32xf32>
    %cst_48 = arith.constant 9.99999996E-13 : f32
    %151 = vector.broadcast %cst_48 : f32 to vector<8x1xf32>
    %152 = arith.addf %148, %151 : vector<8x1xf32>
    %153 = math.rsqrt %152 : vector<8x1xf32>
    %154 = vector.broadcast %153 : vector<8x1xf32> to vector<8x32xf32>
    %155 = arith.mulf %150, %154 : vector<8x32xf32>
    %156 = vector.broadcast %136 : vector<1x32xf32> to vector<8x32xf32>
    %157 = arith.mulf %155, %156 : vector<8x32xf32>
    %158 = vector.broadcast %137 : vector<1x32xf32> to vector<8x32xf32>
    %159 = arith.addf %157, %158 : vector<8x32xf32>
    %c1 = arith.constant 1 : index
    %c0_49 = arith.constant 0 : index
    %c0_50 = arith.constant 0 : index
    %160 = vector.load %arg8[%c1, %c0_49, %c0_50] : memref<2x8x96xf32, #tpu.memory_space<vmem>>, vector<1x8x96xf32>
    %161 = vector.shape_cast %160 : vector<1x8x96xf32> to vector<8x96xf32>
    %162 = arith.truncf %159 : vector<8x32xf32> to vector<8x32xbf16>
    %c1_51 = arith.constant 1 : index
    %c0_52 = arith.constant 0 : index
    %c0_53 = arith.constant 0 : index
    %163 = vector.load %arg4[%c1_51, %c0_52, %c0_53] : memref<2x32x96xbf16, #tpu.memory_space<vmem>>, vector<1x32x96xbf16>
    %164 = vector.shape_cast %163 : vector<1x32x96xbf16> to vector<32x96xbf16>
    %cst_54 = arith.constant dense<0.000000e+00> : vector<8x96xf32>
    %165 = tpu.matmul %162, %164, %cst_54 {dimension_numbers = #tpu.dot_dimension_numbers<[1], [0], [0], [1], [0, 0, 1, 1], [], []>} : vector<8x32xbf16>, vector<32x96xbf16>, vector<8x96xf32> -> vector<8x96xf32>
    %166 = vector.extract_strided_slice %161 {offsets = [0, 0], sizes = [1, 96], strides = [1, 1]} : vector<8x96xf32> to vector<1x96xf32>
    %167 = vector.broadcast %166 : vector<1x96xf32> to vector<8x96xf32>
    %168 = arith.addf %165, %167 : vector<8x96xf32>
    %169 = vector.extract_strided_slice %168 {offsets = [0, 0], sizes = [8, 32], strides = [1, 1]} : vector<8x96xf32> to vector<8x32xf32>
    %170 = vector.extract_strided_slice %169 {offsets = [0, 0], sizes = [8, 16], strides = [1, 1]} : vector<8x32xf32> to vector<8x16xf32>
    %171 = vector.extract_strided_slice %169 {offsets = [0, 16], sizes = [8, 16], strides = [1, 1]} : vector<8x32xf32> to vector<8x16xf32>
    %172 = vector.shape_cast %170 : vector<8x16xf32> to vector<1x8x16xf32>
    %173 = vector.shape_cast %171 : vector<8x16xf32> to vector<1x8x16xf32>
    %174 = tpu.concatenate %172, %173 in 0 : vector<1x8x16xf32>, vector<1x8x16xf32> -> vector<2x8x16xf32>
    %175 = vector.extract_strided_slice %168 {offsets = [0, 32], sizes = [8, 32], strides = [1, 1]} : vector<8x96xf32> to vector<8x32xf32>
    %176 = vector.extract_strided_slice %175 {offsets = [0, 0], sizes = [8, 16], strides = [1, 1]} : vector<8x32xf32> to vector<8x16xf32>
    %177 = vector.extract_strided_slice %175 {offsets = [0, 16], sizes = [8, 16], strides = [1, 1]} : vector<8x32xf32> to vector<8x16xf32>
    %178 = vector.shape_cast %176 : vector<8x16xf32> to vector<1x8x16xf32>
    %179 = vector.shape_cast %177 : vector<8x16xf32> to vector<1x8x16xf32>
    %180 = tpu.concatenate %178, %179 in 0 : vector<1x8x16xf32>, vector<1x8x16xf32> -> vector<2x8x16xf32>
    %181 = vector.extract_strided_slice %168 {offsets = [0, 64], sizes = [8, 32], strides = [1, 1]} : vector<8x96xf32> to vector<8x32xf32>
    %182 = vector.extract_strided_slice %181 {offsets = [0, 0], sizes = [8, 16], strides = [1, 1]} : vector<8x32xf32> to vector<8x16xf32>
    %183 = vector.extract_strided_slice %181 {offsets = [0, 16], sizes = [8, 16], strides = [1, 1]} : vector<8x32xf32> to vector<8x16xf32>
    %184 = vector.shape_cast %182 : vector<8x16xf32> to vector<1x8x16xf32>
    %185 = vector.shape_cast %183 : vector<8x16xf32> to vector<1x8x16xf32>
    %186 = tpu.concatenate %184, %185 in 0 : vector<1x8x16xf32>, vector<1x8x16xf32> -> vector<2x8x16xf32>
    "tpu.trace_start"() <{level = 10 : i32, message = "hqd,hkd->hqk"}> : () -> ()
    %cst_55 = arith.constant dense<0.000000e+00> : vector<2x8x8xf32>
    %187 = tpu.matmul %174, %180, %cst_55 {dimension_numbers = #tpu.dot_dimension_numbers<[2], [2], [1], [1], [0, 0, 0, 1, 1, 1], [0], [0]>} : vector<2x8x16xf32>, vector<2x8x16xf32>, vector<2x8x8xf32> -> vector<2x8x8xf32>
    "tpu.trace_stop"() : () -> ()
    %cst_56 = arith.constant 2.500000e-01 : f32
    %188 = vector.broadcast %cst_56 : f32 to vector<2x8x8xf32>
    %189 = arith.mulf %187, %188 : vector<2x8x8xf32>
    %190 = vector.broadcast %0 : vector<1x1x8xf32> to vector<2x8x8xf32>
    %191 = arith.addf %189, %190 : vector<2x8x8xf32>
    %cst_57 = arith.constant dense<0xFF800000> : vector<2x8xf32>
    %192 = vector.multi_reduction <maximumf>, %191, %cst_57 [2] : vector<2x8x8xf32> to vector<2x8xf32>
    %193 = vector.shape_cast %192 : vector<2x8xf32> to vector<2x8x1xf32>
    %194 = vector.broadcast %193 : vector<2x8x1xf32> to vector<2x8x8xf32>
    %195 = arith.subf %191, %194 : vector<2x8x8xf32>
    %196 = math.exp %195 : vector<2x8x8xf32>
    %cst_58 = arith.constant dense<0.000000e+00> : vector<2x8xf32>
    %197 = vector.multi_reduction <add>, %196, %cst_58 [2] : vector<2x8x8xf32> to vector<2x8xf32>
    %198 = vector.shape_cast %197 : vector<2x8xf32> to vector<2x8x1xf32>
    %199 = tpu.reciprocal %198 {approx = true} : vector<2x8x1xf32> -> vector<2x8x1xf32>
    %200 = vector.broadcast %199 : vector<2x8x1xf32> to vector<2x8x8xf32>
    %201 = arith.mulf %196, %200 : vector<2x8x8xf32>
    "tpu.trace_start"() <{level = 10 : i32, message = "hqk,hkd->hqd"}> : () -> ()
    %cst_59 = arith.constant dense<0.000000e+00> : vector<2x8x16xf32>
    %202 = tpu.matmul %201, %186, %cst_59 {dimension_numbers = #tpu.dot_dimension_numbers<[2], [1], [1], [2], [0, 0, 0, 1, 1, 2], [0], [0]>} : vector<2x8x8xf32>, vector<2x8x16xf32>, vector<2x8x16xf32> -> vector<2x8x16xf32>
    "tpu.trace_stop"() : () -> ()
    %203 = vector.extract_strided_slice %202 {offsets = [0, 0, 0], sizes = [1, 8, 16], strides = [1, 1, 1]} : vector<2x8x16xf32> to vector<1x8x16xf32>
    %204 = vector.shape_cast %203 : vector<1x8x16xf32> to vector<8x16xf32>
    %205 = vector.extract_strided_slice %202 {offsets = [1, 0, 0], sizes = [1, 8, 16], strides = [1, 1, 1]} : vector<2x8x16xf32> to vector<1x8x16xf32>
    %206 = vector.shape_cast %205 : vector<1x8x16xf32> to vector<8x16xf32>
    %207 = tpu.concatenate %204, %206 in 1 : vector<8x16xf32>, vector<8x16xf32> -> vector<8x32xf32>
    %208 = arith.truncf %207 : vector<8x32xf32> to vector<8x32xbf16>
    %c1_60 = arith.constant 1 : index
    %c0_61 = arith.constant 0 : index
    %c0_62 = arith.constant 0 : index
    %209 = vector.load %arg5[%c1_60, %c0_61, %c0_62] : memref<2x32x32xbf16, #tpu.memory_space<vmem>>, vector<1x32x32xbf16>
    %210 = vector.shape_cast %209 : vector<1x32x32xbf16> to vector<32x32xbf16>
    %cst_63 = arith.constant dense<0.000000e+00> : vector<8x32xf32>
    %211 = tpu.matmul %208, %210, %cst_63 {dimension_numbers = #tpu.dot_dimension_numbers<[1], [0], [0], [1], [0, 0, 1, 1], [], []>} : vector<8x32xbf16>, vector<32x32xbf16>, vector<8x32xf32> -> vector<8x32xf32>
    %212 = vector.extract_strided_slice %161 {offsets = [2, 0], sizes = [1, 32], strides = [1, 1]} : vector<8x96xf32> to vector<1x32xf32>
    %213 = vector.broadcast %212 : vector<1x32xf32> to vector<8x32xf32>
    %214 = arith.addf %211, %213 : vector<8x32xf32>
    %215 = arith.addf %159, %214 : vector<8x32xf32>
    %216 = vector.extract_strided_slice %161 {offsets = [3, 0], sizes = [1, 32], strides = [1, 1]} : vector<8x96xf32> to vector<1x32xf32>
    %217 = vector.extract_strided_slice %161 {offsets = [4, 0], sizes = [1, 32], strides = [1, 1]} : vector<8x96xf32> to vector<1x32xf32>
    %cst_64 = arith.constant dense<0.000000e+00> : vector<8xf32>
    %218 = vector.multi_reduction <add>, %215, %cst_64 [1] : vector<8x32xf32> to vector<8xf32>
    %219 = vector.shape_cast %218 : vector<8xf32> to vector<8x1xf32>
    %cst_65 = arith.constant 3.200000e+01 : f32
    %220 = vector.broadcast %cst_65 : f32 to vector<8x1xf32>
    %221 = arith.divf %219, %220 : vector<8x1xf32>
    %222 = arith.mulf %215, %215 : vector<8x32xf32>
    %cst_66 = arith.constant dense<0.000000e+00> : vector<8xf32>
    %223 = vector.multi_reduction <add>, %222, %cst_66 [1] : vector<8x32xf32> to vector<8xf32>
    %224 = vector.shape_cast %223 : vector<8xf32> to vector<8x1xf32>
    %cst_67 = arith.constant 3.200000e+01 : f32
    %225 = vector.broadcast %cst_67 : f32 to vector<8x1xf32>
    %226 = arith.divf %224, %225 : vector<8x1xf32>
    %227 = arith.mulf %221, %221 : vector<8x1xf32>
    %228 = arith.subf %226, %227 : vector<8x1xf32>
    %229 = vector.broadcast %221 : vector<8x1xf32> to vector<8x32xf32>
    %230 = arith.subf %215, %229 : vector<8x32xf32>
    %cst_68 = arith.constant 9.99999996E-13 : f32
    %231 = vector.broadcast %cst_68 : f32 to vector<8x1xf32>
    %232 = arith.addf %228, %231 : vector<8x1xf32>
    %233 = math.rsqrt %232 : vector<8x1xf32>
    %234 = vector.broadcast %233 : vector<8x1xf32> to vector<8x32xf32>
    %235 = arith.mulf %230, %234 : vector<8x32xf32>
    %236 = vector.broadcast %216 : vector<1x32xf32> to vector<8x32xf32>
    %237 = arith.mulf %235, %236 : vector<8x32xf32>
    %238 = vector.broadcast %217 : vector<1x32xf32> to vector<8x32xf32>
    %239 = arith.addf %237, %238 : vector<8x32xf32>
    %240 = arith.truncf %239 : vector<8x32xf32> to vector<8x32xbf16>
    %c1_69 = arith.constant 1 : index
    %c0_70 = arith.constant 0 : index
    %c0_71 = arith.constant 0 : index
    %241 = vector.load %arg6[%c1_69, %c0_70, %c0_71] : memref<2x32x64xbf16, #tpu.memory_space<vmem>>, vector<1x32x64xbf16>
    %242 = vector.shape_cast %241 : vector<1x32x64xbf16> to vector<32x64xbf16>
    %cst_72 = arith.constant dense<0.000000e+00> : vector<8x64xf32>
    %243 = tpu.matmul %240, %242, %cst_72 {dimension_numbers = #tpu.dot_dimension_numbers<[1], [0], [0], [1], [0, 0, 1, 1], [], []>} : vector<8x32xbf16>, vector<32x64xbf16>, vector<8x64xf32> -> vector<8x64xf32>
    %244 = vector.extract_strided_slice %161 {offsets = [1, 0], sizes = [1, 64], strides = [1, 1]} : vector<8x96xf32> to vector<1x64xf32>
    %245 = vector.broadcast %244 : vector<1x64xf32> to vector<8x64xf32>
    %246 = arith.addf %243, %245 : vector<8x64xf32>
    %247 = arith.mulf %246, %246 : vector<8x64xf32>
    %248 = arith.mulf %246, %247 : vector<8x64xf32>
    %cst_73 = arith.constant 4.471500e-02 : f32
    %249 = vector.broadcast %cst_73 : f32 to vector<8x64xf32>
    %250 = arith.mulf %249, %248 : vector<8x64xf32>
    %251 = arith.addf %246, %250 : vector<8x64xf32>
    %cst_74 = arith.constant 0.797884583 : f32
    %252 = vector.broadcast %cst_74 : f32 to vector<8x64xf32>
    %253 = arith.mulf %252, %251 : vector<8x64xf32>
    %254 = math.tanh %253 : vector<8x64xf32>
    %cst_75 = arith.constant 1.000000e+00 : f32
    %255 = vector.broadcast %cst_75 : f32 to vector<8x64xf32>
    %256 = arith.addf %255, %254 : vector<8x64xf32>
    %cst_76 = arith.constant 5.000000e-01 : f32
    %257 = vector.broadcast %cst_76 : f32 to vector<8x64xf32>
    %258 = arith.mulf %257, %256 : vector<8x64xf32>
    %259 = arith.mulf %246, %258 : vector<8x64xf32>
    %260 = arith.truncf %259 : vector<8x64xf32> to vector<8x64xbf16>
    %c1_77 = arith.constant 1 : index
    %c0_78 = arith.constant 0 : index
    %c0_79 = arith.constant 0 : index
    %261 = vector.load %arg7[%c1_77, %c0_78, %c0_79] : memref<2x64x32xbf16, #tpu.memory_space<vmem>>, vector<1x64x32xbf16>
    %262 = vector.shape_cast %261 : vector<1x64x32xbf16> to vector<64x32xbf16>
    %cst_80 = arith.constant dense<0.000000e+00> : vector<8x32xf32>
    %263 = tpu.matmul %260, %262, %cst_80 {dimension_numbers = #tpu.dot_dimension_numbers<[1], [0], [0], [1], [0, 0, 1, 1], [], []>} : vector<8x64xbf16>, vector<64x32xbf16>, vector<8x32xf32> -> vector<8x32xf32>
    %264 = vector.extract_strided_slice %161 {offsets = [7, 0], sizes = [1, 32], strides = [1, 1]} : vector<8x96xf32> to vector<1x32xf32>
    %265 = vector.broadcast %264 : vector<1x32xf32> to vector<8x32xf32>
    %266 = arith.addf %263, %265 : vector<8x32xf32>
    %267 = arith.addf %239, %266 : vector<8x32xf32>
    %268 = vector.extract_strided_slice %161 {offsets = [5, 0], sizes = [1, 32], strides = [1, 1]} : vector<8x96xf32> to vector<1x32xf32>
    %269 = vector.extract_strided_slice %161 {offsets = [6, 0], sizes = [1, 32], strides = [1, 1]} : vector<8x96xf32> to vector<1x32xf32>
    %cst_81 = arith.constant dense<0.000000e+00> : vector<8xf32>
    %270 = vector.multi_reduction <add>, %267, %cst_81 [1] : vector<8x32xf32> to vector<8xf32>
    %271 = vector.shape_cast %270 : vector<8xf32> to vector<8x1xf32>
    %cst_82 = arith.constant 3.200000e+01 : f32
    %272 = vector.broadcast %cst_82 : f32 to vector<8x1xf32>
    %273 = arith.divf %271, %272 : vector<8x1xf32>
    %274 = arith.mulf %267, %267 : vector<8x32xf32>
    %cst_83 = arith.constant dense<0.000000e+00> : vector<8xf32>
    %275 = vector.multi_reduction <add>, %274, %cst_83 [1] : vector<8x32xf32> to vector<8xf32>
    %276 = vector.shape_cast %275 : vector<8xf32> to vector<8x1xf32>
    %cst_84 = arith.constant 3.200000e+01 : f32
    %277 = vector.broadcast %cst_84 : f32 to vector<8x1xf32>
    %278 = arith.divf %276, %277 : vector<8x1xf32>
    %279 = arith.mulf %273, %273 : vector<8x1xf32>
    %280 = arith.subf %278, %279 : vector<8x1xf32>
    %281 = vector.broadcast %273 : vector<8x1xf32> to vector<8x32xf32>
    %282 = arith.subf %267, %281 : vector<8x32xf32>
    %cst_85 = arith.constant 9.99999996E-13 : f32
    %283 = vector.broadcast %cst_85 : f32 to vector<8x1xf32>
    %284 = arith.addf %280, %283 : vector<8x1xf32>
    %285 = math.rsqrt %284 : vector<8x1xf32>
    %286 = vector.broadcast %285 : vector<8x1xf32> to vector<8x32xf32>
    %287 = arith.mulf %282, %286 : vector<8x32xf32>
    %288 = vector.broadcast %268 : vector<1x32xf32> to vector<8x32xf32>
    %289 = arith.mulf %287, %288 : vector<8x32xf32>
    %290 = vector.broadcast %269 : vector<1x32xf32> to vector<8x32xf32>
    %291 = arith.addf %289, %290 : vector<8x32xf32>
    %292 = vector.extract_strided_slice %291 {offsets = [0, 0], sizes = [1, 32], strides = [1, 1]} : vector<8x32xf32> to vector<1x32xf32>
    %293 = arith.truncf %292 : vector<1x32xf32> to vector<1x32xbf16>
    %c0_86 = arith.constant 0 : index
    %c0_87 = arith.constant 0 : index
    %294 = vector.load %arg9[%c0_86, %c0_87] : memref<32x128xbf16, #tpu.memory_space<vmem>>, vector<32x128xbf16>
    %cst_88 = arith.constant dense<0.000000e+00> : vector<1x128xf32>
    %295 = tpu.matmul %293, %294, %cst_88 {dimension_numbers = #tpu.dot_dimension_numbers<[1], [0], [0], [1], [0, 0, 1, 1], [], []>} : vector<1x32xbf16>, vector<32x128xbf16>, vector<1x128xf32> -> vector<1x128xf32>
    %296 = vector.extract_strided_slice %1 {offsets = [2, 0], sizes = [1, 128], strides = [1, 1]} : vector<3x128xf32> to vector<1x128xf32>
    %297 = arith.addf %295, %296 : vector<1x128xf32>
    %298 = math.tanh %297 : vector<1x128xf32>
    %c0_89 = arith.constant 0 : index
    %c0_90 = arith.constant 0 : index
    %c0_91 = arith.constant 0 : index
    %299 = vector.load %arg10[%c0_89, %c0_90, %c0_91] : memref<1x1x128xf32, #tpu.memory_space<vmem>>, vector<1x1x128xf32>
    %300 = vector.shape_cast %299 : vector<1x1x128xf32> to vector<1x128xf32>
    %301 = vector.shape_cast %298 : vector<1x128xf32> to vector<1x1x128xf32>
    tpu.vector_store %arg10[%c0_89, %c0_90, %c0_91], %301 {strides = array<i32>} : memref<1x1x128xf32, #tpu.memory_space<vmem>>, vector<1x1x128xf32>,
    return
  }
  func.func @transform_0(%arg0: i32) -> (i32, i32, i32) {
    %c0_i32 = arith.constant 0 : i32
    %c0_i32_0 = arith.constant 0 : i32
    %c0_i32_1 = arith.constant 0 : i32
    return %arg0, %c0_i32, %c0_i32_0 : i32, i32, i32
  }
  func.func @transform_1(%arg0: i32) -> (i32, i32, i32) {
    %c0_i32 = arith.constant 0 : i32
    %c0_i32_0 = arith.constant 0 : i32
    %c0_i32_1 = arith.constant 0 : i32
    return %arg0, %c0_i32, %c0_i32_0 : i32, i32, i32
  }
  func.func @transform_2(%arg0: i32) -> (i32, i32) {
    %c0_i32 = arith.constant 0 : i32
    %c0_i32_0 = arith.constant 0 : i32
    %c0_i32_1 = arith.constant 0 : i32
    return %c0_i32, %c0_i32_0 : i32, i32
  }
  func.func @transform_3(%arg0: i32) -> (i32, i32, i32) {
    %c0_i32 = arith.constant 0 : i32
    %c0_i32_0 = arith.constant 0 : i32
    %c0_i32_1 = arith.constant 0 : i32
    %c0_i32_2 = arith.constant 0 : i32
    return %c0_i32, %c0_i32_0, %c0_i32_1 : i32, i32, i32
  }
  func.func @transform_4(%arg0: i32) -> (i32, i32, i32) {
    %c0_i32 = arith.constant 0 : i32
    %c0_i32_0 = arith.constant 0 : i32
    %c0_i32_1 = arith.constant 0 : i32
    %c0_i32_2 = arith.constant 0 : i32
    return %c0_i32, %c0_i32_0, %c0_i32_1 : i32, i32, i32
  }
  func.func @transform_5(%arg0: i32) -> (i32, i32, i32) {
    %c0_i32 = arith.constant 0 : i32
    %c0_i32_0 = arith.constant 0 : i32
    %c0_i32_1 = arith.constant 0 : i32
    %c0_i32_2 = arith.constant 0 : i32
    return %c0_i32, %c0_i32_0, %c0_i32_1 : i32, i32, i32
  }
  func.func @transform_6(%arg0: i32) -> (i32, i32, i32) {
    %c0_i32 = arith.constant 0 : i32
    %c0_i32_0 = arith.constant 0 : i32
    %c0_i32_1 = arith.constant 0 : i32
    %c0_i32_2 = arith.constant 0 : i32
    return %c0_i32, %c0_i32_0, %c0_i32_1 : i32, i32, i32
  }
  func.func @transform_7(%arg0: i32) -> (i32, i32, i32) {
    %c0_i32 = arith.constant 0 : i32
    %c0_i32_0 = arith.constant 0 : i32
    %c0_i32_1 = arith.constant 0 : i32
    %c0_i32_2 = arith.constant 0 : i32
    return %c0_i32, %c0_i32_0, %c0_i32_1 : i32, i32, i32
  }
  func.func @transform_8(%arg0: i32) -> (i32, i32) {
    %c0_i32 = arith.constant 0 : i32
    %c0_i32_0 = arith.constant 0 : i32
    %c0_i32_1 = arith.constant 0 : i32
    return %c0_i32, %c0_i32_0 : i32, i32
  }
  func.func @transform_9(%arg0: i32) -> (i32, i32, i32) {
    %c0_i32 = arith.constant 0 : i32
    %c0_i32_0 = arith.constant 0 : i32
    %c0_i32_1 = arith.constant 0 : i32
    return %arg0, %c0_i32, %c0_i32_0 : i32, i32, i32
  }
}

</mosaic_0001>

<bundles_post_ra>
// kernel: tpu_custom_call.1
= control target key start
LH: loop header
LB: loop body
LE: loop exit
PB: predicated region body
PF: predicated region fallthrough
CT: control target
= control target key end

     0   :  { %s3167_s0 = inlined_call_operand.hbm [shape: f32[2,8,32], index: 0, kind: input, shape index: {}]   ;;  %s3168_s1 = inlined_call_operand.hbm [shape: f32[2,1,8], index: 1, kind: input, shape index: {}]   ;;  %s3169_s2 = inlined_call_operand.hbm [shape: f32[3,128], index: 2, kind: input, shape index: {}]   ;;  %s3170_s3 = inlined_call_operand.vmem [shape: bf16[2,32,96], index: 3, kind: input, shape index: {}]   ;;  %s3171_s4 = inlined_call_operand.vmem [shape: bf16[2,32,32], index: 4, kind: input, shape index: {}]   ;;  %s3172_s5 = inlined_call_operand.vmem [shape: bf16[2,32,64], index: 5, kind: input, shape index: {}]   ;;  %s3173_s6 = inlined_call_operand.vmem [shape: bf16[2,64,32], index: 6, kind: input, shape index: {}]   ;;  %s3174_s7 = inlined_call_operand.hbm [shape: f32[2,8,96], index: 7, kind: input, shape index: {}]   ;;  %s3175_s8 = inlined_call_operand.hbm [shape: bf16[32,128], index: 8, kind: input, shape index: {}]   ;;  %s3176_s9 = inlined_call_operand.hbm [shape: f32[2,1,128], index: 9, kind: output, shape index: {}]  }
   0x1   :  { %3181 = sst [smem:[#allocation18_spill]] %s3169_s2 }
   0x2   :  { %3182 = sst [smem:[#allocation19_spill]] %s3174_s7 }
   0x3   :  { %3183 = sst [smem:[#allocation20_spill]] %s3175_s8 }
   0x4   :  { %14 = vsyncpa [#allocation3], 0 }
   0x5   :  { %16 = vsyncpa [#allocation3 + $0x1], 0 }
   0x6   :  { %17 = vsyncpa [#allocation6], 0 }
   0x7   :  { %19 = vsyncpa [#allocation6 + $0x1], 0 }
   0x8   :  { %20 = vsyncpa [#allocation9], 0 }
   0x9   :  { %21 = vsyncpa [#allocation4], 0 }
   0xa   :  { %23 = vsyncpa [#allocation4 + $0x1], 0  ;;  %s2675_s30 = smov 0   ;;  %s2677_s10 = smov 0  }
   0xb   :  { %s2679_s11 = smov 0   ;;  %s2681_s12 = smov 0  }
   0xc LB: > { %s2696_s13 = sadd.s32 4294967295, %s2607_s12   ;;  %s2003_s14 = sadd.s32 4294967294, %s2607_s12   ;;  %s2607_s12 = sphi %s2681_s12, %s3209_s12   ;;  %s2603_s11 = sphi %s2679_s11, %s3208_s11   ;;  %s2599_s10 = sphi %s2677_s10, %s3207_s10   ;;  %s2595_s30 = sphi %s2675_s30, %s3206_s30  }
   0xd   : > { %p49_p0 = scmp.ne.s32.totalorder %s2599_s10, %s2595_s30  ;;  %p3177_p1 = scmp.eq.s32.totalorder %s2696_s13, 0 }
   0xe   : > { %p252_p3 = scmp.eq.s32.totalorder %s2003_s14, 1  ;;  %p2004_p5 = scmp.ge.s32.totalorder %s2607_s12, 1 }
   0xf   : > { %p2705_p4 = por %p3177_p1, %p49_p0  ;;  %p259_p7 = scmp.lt.s32.totalorder %s2607_s12, 3 }
  0x10   : > { %p2710_p6 = por %p252_p3, %p49_p0  ;;  %s2609_s18 = smov [#allocation7]  }
  0x11   : > { %s3184_s15 = scalar_select %p2705_p4, 1, 0 }
  0x12   : > { %s3185_s16 = scalar_select %p2710_p6, 1, 0 }
  0x13   : > { %p2715_p8 = pnand %p2004_p5, %p259_p7  ;;  %s272_s19 = sshll.u32 %s2609_s18, 4  ;;  %s273_s19 = int_to_ptr.vmem [resolvable:$true] %s272_s19 }
  0x14   : > { %s2610_s20 = smov [#allocation8]   ;;  %s2611_s23 = smov [#allocation10]  }
  0x15   : > { %s3186_s17 = scalar_select %p2715_p8, 1, 0 }
  0x16   : > { %p2269_p10 = pneg %p2715_p8  ;;  %s294_s21 = sshll.u32 %s2610_s20, 4  ;;  %s295_s21 = int_to_ptr.vmem [resolvable:$true] %s294_s21 }
  0x17   : > { %s307_s24 = sshll.u32 %s2611_s23, 4  ;;  %s2408_s25 = scalar_lea.vmem %s273_s19, 64  ;;  %s308_s24 = int_to_ptr.vmem [resolvable:$true] %s307_s24 }
  0x18   : > { %p2724_p11 = pnand %p2269_p10, %p3177_p1  ;;  %p2409_p13 = scmp.ne.s32.totalorder %s273_s19, %s2408_s25 }
  0x19   : > { %p2416_p5 = scmp.lt.s32.totalorder %s273_s19, %s273_s19  ;;  %p2417_p7 = scmp.lt.s32.totalorder %s2408_s25, %s2408_s25 }
  0x1a   : > { %p2399_p12 = pneg %p2724_p11 }
  0x1b   : > { %p2418_p9 = por %p2417_p7, %p2416_p5 }
  0x1c   : > { %p2411_p0 = pnand %p2409_p13, %p2399_p12 }
  0x1e   : > { %p2412_p3 = pneg %p2411_p0 }
  0x20   : > { %p2419_p10 = pnand %p2418_p9, %p2412_p3 }
  0x22   : > { %2422 = shalt.err (!%p2419_p10)
}
  0x23   : > { %s3188_s2 = sld [smem:[#allocation18_spill]]  ;;  %s2434_s28 = scalar_lea.vmem %s295_s21, 256 }
  0x24   : > { %p2435_p1 = scmp.ne.s32.totalorder %s295_s21, %s2434_s28  ;;  %p2442_p13 = scmp.lt.s32.totalorder %s295_s21, %s295_s21 }
  0x25   : > { %p2443_p0 = scmp.lt.s32.totalorder %s2434_s28, %s2434_s28 }
  0x26   : > { %p2437_p2 = pnand %p2435_p1, %p2399_p12 }
  0x27   : > { %p2444_p4 = por %p2443_p0, %p2442_p13 }
  0x28   : > { %p2438_p6 = pneg %p2437_p2 }
  0x29   : > { %2272 = dma.hbm_to_vmem [thread:$0]  (!%p2724_p11), %s3188_s2, 64, %s273_s19, [#allocation6]  }
  0x2a   : > { %p2445_p8 = pnand %p2444_p4, %p2438_p6 }
  0x2c   : > { %2448 = shalt.err (!%p2445_p8)
}
  0x2d   : > { %s2612_s29 = smov 128   ;;  %s2613_s14 = smov 8  }
  0x2e   : > { %s3189_s7 = sld [smem:[#allocation19_spill]]  ;;  %s2460_s19 = scalar_lea.vmem %s308_s24, 256 }
  0x2f   : > { %p2461_p9 = scmp.ne.s32.totalorder %s308_s24, %s2460_s19  ;;  %p2468_p3 = scmp.lt.s32.totalorder %s308_s24, %s308_s24 }
  0x30   : > { %p2469_p5 = scmp.lt.s32.totalorder %s2460_s19, %s2460_s19 }
  0x31   : > { %p2463_p1 = pnand %p2461_p9, %p2399_p12 }
  0x32   : > { %p2470_p4 = por %p2469_p5, %p2468_p3 }
  0x33   : > { %p2464_p2 = pneg %p2463_p1 }
  0x34   : > { %2275 = dma.hbm_to_vmem [thread:$0]  (!%p2724_p11), %s3189_s7, 256, %s295_s21, [#allocation9], %s2612_s29, %s2612_s29, %s2613_s14  }
  0x35   : > { %p2471_p6 = pnand %p2470_p4, %p2464_p2 }
  0x37   : > { %2474 = shalt.err (!%p2471_p6)
}
  0x38   : > { %s2614_s23 = smov 64   ;;  %s2615_s21 = smov 4  }
  0x39   : > { %s3190_s8 = sld [smem:[#allocation20_spill]]  ;;  %s2755_s27 = sadd.s32 1, %s2607_s12  }
  0x3a   : > { %s33_s28 = ssub.s32 %s2607_s12, %s2755_s27  ;;  %s36_s29 = sadd.s32 1, %s2603_s11 }
  0x3b   : > { %p34_p8 = scmp.eq.s32.totalorder %s33_s28, 0  ;;  %p43_p12 = scmp.ne.s32.totalorder %s2603_s11, %s2599_s10 }
  0x3c   : > { %p44_p7 = scmp.eq.s32.totalorder %s2607_s12, 0  ;;  %p2293_p10 = scmp.lt.s32.totalorder %s2607_s12, 2 }
  0x3d   : > { %s2765_s14 = scalar_select %p34_p8, %s2603_s11, %s36_s29  }
  0x3e   : > { %p45_p13 = por %p44_p7, %p43_p12  ;;  %p3192_p0 = scmp.eq.s32.totalorder %s2696_s13, 1 }
  0x3f   : > { %2278 = dma.hbm_to_vmem [thread:$0]  (!%p2724_p11), %s3190_s8, 256, %s308_s24, [#allocation9], %s2614_s23, %s2614_s23, %s2615_s21  }
  0x40   : > { %3191 = sst [smem:[#allocation17_spill]] %s2765_s14  ;;  %p2769_p9 = por %p3192_p0, %p43_p12 }
  0x41   : > { %s2774_s18 = sand.u32 1, %s2603_s11   ;;  %s2010_s24 = sshll.u32 %s2607_s12, 7 }
  0x42   : > { %s3193_s22 = scalar_select %p2769_p9, 1, 0 }
  0x43   : > { %s2009_s20 = sshll.u32 %s2774_s18, 3  ;;  %s2781_s21 = scalar_lea.hbm %s3167_s0, %s2010_s24 }
  0x44   : > { %s325_s25 = scalar_lea.vmem [#allocation2], %s2009_s20  ;;  %p2783_p11 = pnand %p2293_p10, %p45_p13 }
  0x45   : > { %s332_s26 = sshll.u32 %s325_s25, 4  ;;  %s322_s2 = scalar_lea.sflag [#allocation3], %s2774_s18  ;;  %s333_s26 = int_to_ptr.vmem [resolvable:$true] %s332_s26 }
  0x46   : > { %s2475_s7 = scalar_lea.hbm %s2781_s21, 128  ;;  %p2477_p2 = pneg %p2783_p11 }
  0x47   : > { %p2476_p1 = scmp.ne.s32.totalorder %s2781_s21, %s2475_s7  ;;  %s2480_s19 = scalar_lea.hbm %s3167_s0, 256 }
  0x48   : > { %p2481_p4 = scmp.lt.s32.totalorder %s2781_s21, %s3167_s0  ;;  %p2482_p6 = scmp.lt.s32.totalorder %s2480_s19, %s2475_s7 }
  0x49   : > { %p2478_p3 = pnand %p2477_p2, %p2476_p1 }
  0x4a   : > { %p2483_p8 = por %p2482_p6, %p2481_p4 }
  0x4b   : > { %p2479_p5 = pneg %p2478_p3 }
  0x4d   : > { %p2484_p12 = pnand %p2483_p8, %p2479_p5 }
  0x4f   : > { %2487 = shalt.err (!%p2484_p12)
}
  0x50   : > { %s2488_s29 = scalar_lea.vmem %s333_s26, 128  ;;  %s2616_s8 = smov [#allocation2]  }
  0x51   : > { %p2489_p7 = scmp.ne.s32.totalorder %s333_s26, %s2488_s29  ;;  %s2493_s14 = sshll.u32 %s2616_s8, 4  ;;  %s2494_s14 = int_to_ptr.vmem [resolvable:$false] %s2493_s14 }
  0x52   : > { %s2495_s24 = scalar_lea.vmem %s2494_s14, 256  ;;  %p2496_p0 = scmp.lt.s32.totalorder %s333_s26, %s2494_s14 }
  0x53   : > { %p2491_p10 = pnand %p2489_p7, %p2477_p2  ;;  %p2497_p1 = scmp.lt.s32.totalorder %s2495_s24, %s2488_s29 }
  0x55   : > { %p2492_p13 = pneg %p2491_p10  ;;  %p2498_p3 = por %p2497_p1, %p2496_p0 }
  0x57   : > { %p2499_p9 = pnand %p2498_p3, %p2492_p13 }
  0x59   : > { %2502 = shalt.err (!%p2499_p9)
}
  0x5a   : > { %2282 = dma.hbm_to_vmem [thread:$0]  (!%p2783_p11), %s2781_s21, 128, %s333_s26, %s322_s2  }
  0x5b   : > { %s2011_s7 = sshll.u32 %s2607_s12, 4  ;;  %s342_s14 = scalar_lea.vmem [#allocation5], %s2774_s18 }
  0x5c   : > { %s2813_s8 = scalar_lea.hbm %s3168_s1, %s2011_s7  ;;  %s349_s29 = sshll.u32 %s342_s14, 4  ;;  %s350_s29 = int_to_ptr.vmem [resolvable:$true] %s349_s29 }
  0x5d   : > { %s3195_s23 = sand.u32 1, %s2607_s12   ;;  %s2503_s24 = scalar_lea.hbm %s2813_s8, 16 }
  0x5e   : > { %s340_s25 = scalar_lea.sflag [#allocation6], %s3195_s23  ;;  %p2504_p9 = scmp.ne.s32.totalorder %s2813_s8, %s2503_s24 }
  0x5f   : > { %s2508_s26 = scalar_lea.hbm %s3168_s1, 32  ;;  %p2509_p6 = scmp.lt.s32.totalorder %s2813_s8, %s3168_s1 }
  0x60   : > { %p2506_p5 = pnand %p2504_p9, %p2477_p2  ;;  %p2510_p8 = scmp.lt.s32.totalorder %s2508_s26, %s2503_s24 }
  0x62   : > { %p2507_p4 = pneg %p2506_p5  ;;  %p2511_p12 = por %p2510_p8, %p2509_p6 }
  0x64   : > { %p2512_p7 = pnand %p2511_p12, %p2507_p4 }
  0x66   : > { %2515 = shalt.err (!%p2512_p7)
}
  0x67   : > { %s2516_s18 = scalar_lea.vmem %s350_s29, 16  ;;  %s2617_s19 = smov [#allocation5]  }
  0x68   : > { %p2517_p10 = scmp.ne.s32.totalorder %s350_s29, %s2516_s18  ;;  %s2521_s14 = sshll.u32 %s2617_s19, 4  ;;  %s2522_s14 = int_to_ptr.vmem [resolvable:$false] %s2521_s14 }
  0x69   : > { %s2523_s23 = scalar_lea.vmem %s2522_s14, 32  ;;  %p2524_p1 = scmp.lt.s32.totalorder %s350_s29, %s2522_s14 }
  0x6a   : > { %p2519_p13 = pnand %p2517_p10, %p2477_p2  ;;  %p2525_p3 = scmp.lt.s32.totalorder %s2523_s23, %s2516_s18 }
  0x6c   : > { %p2520_p0 = pneg %p2519_p13  ;;  %p2526_p9 = por %p2525_p3, %p2524_p1 }
  0x6e   : > { %p2527_p5 = pnand %p2526_p9, %p2520_p0 }
  0x70   : > { %2530 = shalt.err (!%p2527_p5)
}
  0x71   : > { %2285 = dma.hbm_to_vmem [thread:$0]  (!%p2783_p11), %s2813_s8, 16, %s350_s29, %s340_s25  }
  0x72   : > { %p3196_p4 = scmp.ne.s32.totalorder %s3186_s17, 0 }
  0x73   : > { %s2839_s24 = sand.u32 (!%p3196_p4), 1, %s2599_s10   ;;  %p3197_p2 = scmp.ne.s32.totalorder (!%p3196_p4), %s3184_s15, 0 }
  0x74   : > { %358 = sbr.rel (%p3196_p4) target bundleno = 4942 (0x134e), region = 56  ;;  %s2013_s2 = sshll.u32 (!%p3196_p4), %s2839_s24, 3 }
  0x75   : > { %s361_s21 = scalar_lea.sflag (!%p3196_p4), [#allocation3], %s2839_s24  ;;  %s364_s26 = scalar_lea.vmem (!%p3196_p4), [#allocation2], %s2013_s2 }
  0x79   : > { %2574 = dma.done.wait (%p3197_p2), %s361_s21, 128  }
  0x7a   : > { %2576 = vsyncadd (%p3197_p2), %s361_s21, 4294967168  ;;  %s369_s28 = sand.u32 1, %s2696_s13   ;;  %s372_s8 = scalar_lea.vmem [#allocation5], %s2839_s24 }
  0x7b   : > { %s370_s17 = scalar_lea.sflag [#allocation6], %s369_s28 }
  0x7c   : > { %2578 = dma.done.wait (%p3197_p2), %s370_s17, 16  }
  0x7d   : > { %2580 = vsyncadd (%p3197_p2), %s370_s17, 4294967280  ;;  %p3198_p11 = scmp.eq.s32.totalorder %s2696_s13, 0 }
  0x7f   : > { %2582 = dma.done.wait (%p3198_p11), [#allocation6], 64   ;;  %p3199_p6 = pmov %p3198_p11 }
  0x81   : > { %2584 = vsyncadd (%p3199_p6), [#allocation6], 4294967232  ;;  %p3200_p8 = pmov %p3199_p6 }
  0x82   : > { %p3201_p12 = pmov %p3199_p6 }
  0x83   : > { %2586 = dma.done.wait (%p3200_p8), [#allocation9], 512  }
  0x84   : > { %2588 = vsyncadd (%p3201_p12), [#allocation9], 4294966784  ;;  %vm426_vm0 = vcmask 261120   ;;  %v425_v0 = vld [vmem:[%s364_s26] sm:$0xff]  ;;  %v2618_v5 = vmov 0.0   ;;  %vm2619_vm1 = vmmov 0   ;;  %v443_v14 = vlaneseq }
  0x85   : > { %v427_v1 = vsel %vm426_vm0, %v425_v0, 0.0  ;;  %v432_v2 = vmul.f32 %v425_v0, %v425_v0  ;;  %v2343_v4 = vld [vmem:[%s3170_s3 + $0x8] sm:$0xff]   ;;  %2131 = vmatprep.subr.bf16.mxu0 %v2618_v5  ;;  %2135 = vmatprep.mubr.msk.bf16.mxu0 %vm2619_vm1, %v2618_v5  ;;  %v2344_v6 = vld [vmem:[%s3170_s3] sm:$0xff]   ;;  %v2882_v17 = vld [vmem:[#allocation7] sm:$0x7]  ;;  %s2620_s20 = smov 112  }
  0x86   : > { %428 = vadd.xlane.f32.xlu0 %v427_v1  ;;  %2132 = vmatpush3.bf16.msra.mxu0 %v2343_v4  ;;  %v2877_v15 = vshrl.u32 %v443_v14, 7  ;;  %v2898_v27 = vld [vmem:[#allocation8] sm:$0xff]  ;;  %s2621_s18 = smov 96   ;;  %vm523_vm2 = vcmask 130048   ;;  %v2917_v38 = vld [vmem:[%s372_s8] ss:$0 sm:$0xff] }
  0x87   : > { %v433_v3 = vsel %vm426_vm0, %v432_v2, 0.0  ;;  %2139 = vmatprep.subr.mxu1 %v2618_v5  ;;  %2133 = vmatprep.subr.bf16.mxu0 %v2618_v5  ;;  %vm684_vm3 = vcmask 64512   ;;  %s2622_s19 = smov 64   ;;  %v2345_v2 = vld [vmem:[%s3171_s4 + $0x8] sm:$0xff]   ;;  %s2623_s26 = smov 16   ;;  %vm1064_vm4 = vcmask 523264  }
  0x88   : > { %2141 = vmatprep.mubr.msk.f32.mxu1 %vm2619_vm1, %v2618_v5  ;;  %v2880_v16 = vsub.s32 0, %v2877_v15  ;;  %v2885_v18 = vsub.s32 1, %v2877_v15  ;;  %s1877_s23 = scalar_lea.sflag [#allocation4], %s2839_s24  ;;  %p3202_p10 = scmp.ne.s32.totalorder %s3193_s22, 0 }
  0x89   : > { %s2624_s21 = smov [#allocation11]  }
  0x8a   : > { %434 = vadd.xlane.f32.xlu0 %v433_v3  ;;  %2134 = vmatpush3.bf16.msra.mxu0 %v2344_v6  ;;  %v446_v20 = vrot.slane %v2882_v17, %v2880_v16  ;;  %v451_v23 = vrot.slane %v2882_v17, %v2885_v18  ;;  %v462_v28 = vrot.slane %v2898_v27, %v2880_v16  ;;  %v2346_v6 = vld [vmem:[%s3171_s4] sm:$0xff]   ;;  %s2535_s28 = sshll.u32 %s2624_s21, 4  ;;  %s2536_s28 = int_to_ptr.vmem [resolvable:$false] %s2535_s28 }
  0x8b   : > { %2154 = vmatprep.subr.mxu0 %v2618_v5 }
 0x10f   : > { %v429_v7 = vpop.xlane.xlu0 %428 }
 0x110   : > { %v431_v8 = vmul.f32 0.03125, %v429_v7 }
 0x112   : > { %v437_v10 = vmul.f32 %v431_v8, %v431_v8  ;;  %v439_v19 = vsub.f32 %v425_v0, %v431_v8 }
 0x113   : > { %v435_v9 = vpop.xlane.xlu0 %434 }
 0x114   : > { %v436_v11 = vmul.f32 0.03125, %v435_v9 }
 0x116   : > { %v438_v12 = vsub.f32 %v436_v11, %v437_v10 }
 0x118   : > { %v440_v13 = vadd.f32 1e-12, %v438_v12  ;;  %v871_v12 = vsub.s32 2, %v2877_v15 }
 0x11a   : > { %2365 = vrsqrt.f32 %v440_v13  ;;  %v872_v13 = vrot.slane %v2898_v27, %v871_v12 }
 0x127   : > { %v2366_v21 = vpop.eup %2365 }
 0x128   : > { %v442_v22 = vmul.f32 %v2366_v21, %v439_v19 }
 0x12a   : > { %v447_v24 = vmul.f32 %v446_v20, %v442_v22 }
 0x12c   : > { %v2891_v25 = vadd.f32 %v451_v23, %v447_v24 }
 0x12e   : > { %v454_v26 = vpack.c.bf16 %v2891_v25, %v2891_v25 }
 0x130   : > { %2136 = vmatmul.mubr.msk.bf16.vlgmr.msra.gmra.mxu0 %vm426_vm0, %v454_v26 }
 0x131   : > { %2156 = vmatprep.mubr.msk.f32.mxu0 %vm2619_vm1, %v2618_v5 }
 0x1f0   : > { %v512_v29 = vpop.f32.mrf.mxu0 }
 0x1f1   : > { %v513_v30 = vadd.f32 %v512_v29, %v462_v28  ;;  %v2347_v29 = vld [vmem:[%s3172_s5 + $0x8] sm:$0xff]  }
 0x1f2   : > { %v2137_v31 = vpop.f32.mrf.mxu0 }
 0x1f3   : > { %519 = vrot.lane.b32.xlu1 %v513_v30, %s2620_s20 }
 0x1f4   : > { %v515_v32 = vpop.f32.mrf.mxu0 }
 0x1f6   : > { %v2138_v33 = vpop.f32.mrf.mxu0 }
 0x1f7   : > { %521 = vrot.lane.b32.xlu1 %v513_v30, %s2621_s18 }
 0x265   : > { %v520_v34 = vpop.permute.xlu1 %519 }
 0x266   : > { %598 = vrot.lane.b32.xlu0 %v520_v34, %s2621_s18 }
 0x269   : > { %v522_v35 = vpop.permute.xlu1 %521 }
 0x26a   : > { %2140 = vmatpush3.xpose.msk.msra.mxu1 %vm523_vm2, %v522_v35 }
 0x26b   : > { %2144 = vmatprep.subr.mxu1 %v2618_v5 }
 0x26d   : > { %2142 = vmatmul.mubr.msk.f32.vlgmr.msra.gmra.mxu1 %vm523_vm2, %v513_v30 }
 0x26e   : > { %2146 = vmatprep.mubr.msk.f32.mxu1 %vm2619_vm1, %v2618_v5 }
 0x2d8   : > { %v599_v36 = vpop.permute.xlu0 %598 }
 0x2d9   : > { %2145 = vmatpush3.xpose.msk.msra.mxu1 %vm523_vm2, %v599_v36 }
 0x2da   : > { %2149 = vmatprep.subr.mxu1 %v2618_v5 }
 0x2dc   : > { %2147 = vmatmul.mubr.msk.f32.vlgmr.msra.gmra.mxu1 %vm523_vm2, %v520_v34 }
 0x2dd   : > { %2151 = vmatprep.mubr.msk.f32.mxu1 %vm2619_vm1, %v2618_v5 }
 0x32d   : > { %v594_v37 = vpop.f32.mrf.mxu1 }
 0x32e   : > { %v674_v39 = vmul.f32 0.25, %v594_v37  ;;  %v946_v37 = vsub.s32 3, %v2877_v15 }
 0x32f   : > { %v2143_v40 = vpop.f32.mrf.mxu1 }
 0x330   : > { %v682_v41 = vadd.f32 %v2917_v38, %v674_v39  ;;  %v951_v39 = vsub.s32 4, %v2877_v15 }
 0x332   : > { %v685_v42 = vsel %vm684_vm3, %v682_v41, -inf }
 0x333   : > { %686 = vmax.xlane.f32.xlu0 %v685_v42 }
 0x39c   : > { %v670_v43 = vpop.f32.mrf.mxu1 }
 0x39d   : > { %v675_v44 = vmul.f32 0.25, %v670_v43 }
 0x39e   : > { %v2148_v45 = vpop.f32.mrf.mxu1 }
 0x39f   : > { %v683_v46 = vadd.f32 %v2917_v38, %v675_v44  ;;  %v952_v44 = vrot.slane %v2898_v27, %v951_v39 }
 0x3a1   : > { %v688_v47 = vsel %vm684_vm3, %v683_v46, -inf }
 0x3a2   : > { %689 = vmax.xlane.f32.xlu1 %v688_v47 }
 0x3bc   : > { %v687_v48 = vpop.xlane.xlu0 %686 }
 0x3bd   : > { %v691_v49 = vsub.f32 %v682_v41, %v687_v48  ;;  %v947_v41 = vrot.slane %v2898_v27, %v946_v37  ;;  %v2349_v48 = vld [vmem:[%s3173_s6 + $0x18] sm:$0xff]  }
 0x3bf   : > { %v693_v50 = vmul.f32 1.442695, %v691_v49  ;;  %v2350_v49 = vld [vmem:[%s3173_s6 + $0x10] sm:$0xff]  }
 0x3c1   : > { %2367 = vpow2.f32 %v693_v50  ;;  %v2351_v50 = vld [vmem:[%s3173_s6 + $0x8] sm:$0xff]  }
 0x3ce   : > { %v2368_v51 = vpop.eup %2367 }
 0x3cf   : > { %v697_v52 = vsel %vm684_vm3, %v2368_v51, 0.0 }
 0x3d0   : > { %698 = vadd.xlane.f32.xlu0 %v697_v52  ;;  %v962_v52 = vrot.slane %v2898_v27, %v2885_v18 }
 0x3e6   : > { %707 = vrot.lane.b32.xlu0 %v513_v30, %s2622_s19  ;;  %v2348_v30 = vld [vmem:[%s3172_s5] sm:$0xff]  }
 0x42b   : > { %v690_v53 = vpop.xlane.xlu1 %689 }
 0x42c   : > { %v692_v54 = vsub.f32 %v683_v46, %v690_v53 }
 0x42e   : > { %v695_v55 = vmul.f32 1.442695, %v692_v54 }
 0x430   : > { %2369 = vpow2.f32 %v695_v55 }
 0x43d   : > { %v2370_v56 = vpop.eup %2369 }
 0x43e   : > { %v700_v57 = vsel %vm684_vm3, %v2370_v56, 0.0 }
 0x43f   : > { %701 = vadd.xlane.f32.xlu1 %v700_v57 }
 0x450   : > { %783 = vrot.lane.b32.xlu1 %v520_v34, %s2622_s19 }
 0x459   : > { %v699_v58 = vpop.xlane.xlu0 %698 }
 0x45a   : > { %2371 = vrcp.f32 %v699_v58 }
 0x45d   : > { %v708_v59 = vpop.permute.xlu0 %707 }
 0x45e   : > { %2150 = vmatpush3.msra.mxu1 %v708_v59 }
 0x45f   : > { %2159 = vmatprep.subr.bf16.mxu1 %v2618_v5 }
 0x467   : > { %v2372_v60 = vpop.eup %2371 }
 0x468   : > { %v705_v61 = vmul.f32 %v2372_v60, %v2368_v51  ;;  %v2352_v51 = vld [vmem:[%s3173_s6] sm:$0xff]  }
 0x46a   : > { %2152 = vmatmul.mubr.msk.f32.vlgmr.msra.gmra.mxu1 %vm684_vm3, %v705_v61 }
 0x46b   : > { %2163 = vmatprep.mubr.msk.bf16.mxu1 %vm2619_vm1, %v2618_v5  ;;  %2160 = vmatpush3.bf16.msra.mxu1 %v2345_v2 }
 0x46c   : > { %2161 = vmatprep.subr.bf16.mxu1 %v2618_v5 }
 0x46f   : > { %2162 = vmatpush3.bf16.msra.mxu1 %v2346_v6 }
 0x470   : > { %2175 = vmatprep.subr.bf16.mxu1 %v2618_v5 }
 0x4c8   : > { %v702_v62 = vpop.xlane.xlu1 %701 }
 0x4c9   : > { %2373 = vrcp.f32 %v702_v62 }
 0x4cc   : > { %v784_v63 = vpop.permute.xlu1 %783 }
 0x4cd   : > { %2155 = vmatpush3.msra.mxu0 %v784_v63 }
 0x4ce   : > { %2167 = vmatprep.subr.bf16.mxu0 %v2618_v5 }
 0x4d6   : > { %v2374_v0 = vpop.eup %2373 }
 0x4d7   : > { %v706_v1 = vmul.f32 %v2374_v0, %v2370_v56 }
 0x4d9   : > { %2157 = vmatmul.mubr.msk.f32.vlgmr.msra.gmra.mxu0 %vm684_vm3, %v706_v1 }
 0x4da   : > { %2171 = vmatprep.mubr.msk.bf16.mxu0 %vm2619_vm1, %v2618_v5  ;;  %2168 = vmatpush3.bf16.msra.mxu0 %v2347_v29 }
 0x4db   : > { %2169 = vmatprep.subr.bf16.mxu0 %v2618_v5 }
 0x4de   : > { %2170 = vmatpush3.bf16.msra.mxu0 %v2348_v30 }
 0x4df   : > { %2187 = vmatprep.subr.bf16.mxu0 %v2618_v5 }
 0x52a   : > { %v779_v3 = vpop.f32.mrf.mxu1 }
 0x52c   : > { %v2153_v4 = vpop.f32.mrf.mxu1 }
 0x52d   : > { %v1038_v4 = vsub.s32 7, %v2877_v15 }
 0x52f   : > { %v1039_v6 = vrot.slane %v2898_v27, %v1038_v4 }
 0x599   : > { %v855_v7 = vpop.f32.mrf.mxu0 }
 0x59a   : > { %860 = vrot.lane.b32.xlu1 %v855_v7, %s2623_s26 }
 0x59b   : > { %v2158_v8 = vpop.f32.mrf.mxu0 }
 0x60c   : > { %v861_v9 = vpop.permute.xlu1 %860 }
 0x60d   : > { %v863_v10 = vsel %vm523_vm2, %v779_v3, %v861_v9 }
 0x60e   : > { %v864_v11 = vpack.c.bf16 %v863_v10, %v863_v10 }
 0x610   : > { %2164 = vmatmul.mubr.msk.bf16.vlgmr.msra.gmra.mxu1 %vm426_vm0, %v864_v11 }
 0x611   : > { %2183 = vmatprep.mubr.msk.bf16.mxu1 %vm2619_vm1, %v2618_v5  ;;  %2176 = vmatpush3.bf16.msra.mxu1 %v2349_v48 }
 0x612   : > { %2177 = vmatprep.subr.bf16.mxu1 %v2618_v5 }
 0x615   : > { %2178 = vmatpush3.bf16.msra.mxu1 %v2350_v49 }
 0x616   : > { %2179 = vmatprep.subr.bf16.mxu1 %v2618_v5 }
 0x619   : > { %2180 = vmatpush3.bf16.msra.mxu1 %v2351_v50 }
 0x61a   : > { %2181 = vmatprep.subr.bf16.mxu1 %v2618_v5 }
 0x61d   : > { %2182 = vmatpush3.bf16.msra.mxu1 %v2352_v51 }
 0x61e   : > { %2205 = vmatprep.subr.mxu1 %v2618_v5 }
 0x6d0   : > { %v922_v14 = vpop.f32.mrf.mxu1 }
 0x6d1   : > { %v923_v19 = vadd.f32 %v922_v14, %v872_v13 }
 0x6d2   : > { %v2165_v20 = vpop.f32.mrf.mxu1 }
 0x6d3   : > { %v928_v21 = vadd.f32 %v923_v19, %v2891_v25 }
 0x6d4   : > { %v925_v22 = vpop.f32.mrf.mxu1 }
 0x6d5   : > { %v929_v23 = vsel %vm426_vm0, %v928_v21, 0.0  ;;  %v933_v24 = vmul.f32 %v928_v21, %v928_v21  ;;  %v2354_v22 = vld [vmem:[%s3170_s3 + $0x10] sm:$0xff]  }
 0x6d6   : > { %930 = vadd.xlane.f32.xlu1 %v929_v23  ;;  %v2166_v26 = vpop.f32.mrf.mxu1 }
 0x6d7   : > { %v934_v28 = vsel %vm426_vm0, %v933_v24, 0.0 }
 0x6d8   : > { %935 = vadd.xlane.f32.xlu0 %v934_v28 }
 0x75f   : > { %v931_v25 = vpop.xlane.xlu1 %930 }
 0x760   : > { %v932_v31 = vmul.f32 0.03125, %v931_v25 }
 0x761   : > { %v936_v32 = vpop.xlane.xlu0 %935 }
 0x762   : > { %v938_v33 = vmul.f32 %v932_v31, %v932_v31  ;;  %v937_v34 = vmul.f32 0.03125, %v936_v32  ;;  %v940_v40 = vsub.f32 %v928_v21, %v932_v31  ;;  %v2353_v21 = vld [vmem:[%s3170_s3 + $0x18] sm:$0xff]   ;;  %v1126_v31 = vsub.s32 5, %v2877_v15 }
 0x763   : > { %v1131_v32 = vsub.s32 6, %v2877_v15 }
 0x764   : > { %v939_v35 = vsub.f32 %v937_v34, %v938_v33  ;;  %v1127_v34 = vrot.slane %v2898_v27, %v1126_v31 }
 0x766   : > { %v941_v36 = vadd.f32 1e-12, %v939_v35 }
 0x768   : > { %2375 = vrsqrt.f32 %v941_v36 }
 0x775   : > { %v2376_v42 = vpop.eup %2375 }
 0x776   : > { %v943_v43 = vmul.f32 %v2376_v42, %v940_v40  ;;  %v1132_v40 = vrot.slane %v2898_v27, %v1131_v32 }
 0x778   : > { %v948_v45 = vmul.f32 %v947_v41, %v943_v43 }
 0x77a   : > { %v953_v46 = vadd.f32 %v952_v44, %v948_v45  ;;  %v3024_v44 = vld [vmem:[#allocation8 + $0x8] sm:$0xff] }
 0x77b   : > { %v1145_v45 = vrot.slane %v3024_v44, %v2880_v16 }
 0x77c   : > { %v954_v47 = vpack.c.bf16 %v953_v46, %v953_v46 }
 0x77e   : > { %2172 = vmatmul.mubr.msk.bf16.vlgmr.msra.gmra.mxu0 %vm426_vm0, %v954_v47 }
 0x77f   : > { %2191 = vmatprep.mubr.msk.bf16.mxu0 %vm2619_vm1, %v2618_v5  ;;  %2188 = vmatpush3.bf16.msra.mxu0 %v2353_v21 }
 0x780   : > { %2189 = vmatprep.subr.bf16.mxu0 %v2618_v5 }
 0x783   : > { %2190 = vmatpush3.bf16.msra.mxu0 %v2354_v22  ;;  %v2355_v22 = vld [vmem:[%s3171_s4 + $0x18] sm:$0xff]  }
 0x784   : > { %2195 = vmatprep.subr.mxu0 %v2618_v5 }
 0x83e   : > { %v1012_v53 = vpop.f32.mrf.mxu0 }
 0x83f   : > { %v1013_v54 = vadd.f32 %v1012_v53, %v962_v52 }
 0x840   : > { %v2173_v55 = vpop.f32.mrf.mxu0 }
 0x841   : > { %v1018_v56 = vmul.f32 %v1013_v54, %v1013_v54 }
 0x842   : > { %v1015_v57 = vpop.f32.mrf.mxu0 }
 0x843   : > { %v1019_v58 = vmul.f32 %v1018_v56, %v1013_v54 }
 0x844   : > { %v2174_v59 = vpop.f32.mrf.mxu0 }
 0x845   : > { %v1020_v60 = vmul.f32 0.044715, %v1019_v58 }
 0x847   : > { %v1021_v61 = vadd.f32 %v1020_v60, %v1013_v54 }
 0x849   : > { %v1022_v62 = vmul.f32 0.7978846, %v1021_v61 }
 0x84b   : > { %2377 = vtanh.f32 %v1022_v62 }
 0x858   : > { %v2378_v63 = vpop.eup %2377 }
 0x859   : > { %v1024_v0 = vadd.f32 1.0, %v2378_v63 }
 0x85b   : > { %v1025_v1 = vmul.f32 0.5, %v1024_v0 }
 0x85d   : > { %v1026_v2 = vmul.f32 %v1025_v1, %v1013_v54 }
 0x85f   : > { %v1027_v3 = vpack.c.bf16 %v1026_v2, %v1026_v2 }
 0x861   : > { %2184 = vmatmul.mubr.msk.bf16.vlgmr.msra.gmra.mxu1 %vm1064_vm4, %v1027_v3 }
 0x862   : > { %2207 = vmatprep.mubr.msk.f32.mxu1 %vm2619_vm1, %v2618_v5 }
 0x921   : > { %v1102_v7 = vpop.f32.mrf.mxu1 }
 0x922   : > { %v1103_v8 = vadd.f32 %v1102_v7, %v1039_v6 }
 0x923   : > { %v2185_v9 = vpop.f32.mrf.mxu1 }
 0x924   : > { %v1108_v10 = vadd.f32 %v1103_v8, %v953_v46 }
 0x925   : > { %v1105_v11 = vpop.f32.mrf.mxu1 }
 0x926   : > { %v1109_v13 = vsel %vm426_vm0, %v1108_v10, 0.0  ;;  %v1113_v14 = vmul.f32 %v1108_v10, %v1108_v10 }
 0x927   : > { %1110 = vadd.xlane.f32.xlu1 %v1109_v13  ;;  %v2186_v19 = vpop.f32.mrf.mxu1 }
 0x928   : > { %v1114_v20 = vsel %vm426_vm0, %v1113_v14, 0.0 }
 0x92b   : > { %1115 = vadd.xlane.f32.xlu1 %v1114_v20 }
 0x9b0   : > { %v1111_v23 = vpop.xlane.xlu1 %1110 }
 0x9b1   : > { %v1112_v24 = vmul.f32 0.03125, %v1111_v23  ;;  %v2356_v23 = vld [vmem:[%s3171_s4 + $0x10] sm:$0xff]  }
 0x9b3   : > { %v1118_v28 = vmul.f32 %v1112_v24, %v1112_v24  ;;  %v1120_v33 = vsub.f32 %v1108_v10, %v1112_v24 }
 0x9b4   : > { %v1116_v26 = vpop.xlane.xlu1 %1115 }
 0x9b5   : > { %v1117_v29 = vmul.f32 0.03125, %v1116_v26 }
 0x9b7   : > { %v1119_v30 = vsub.f32 %v1117_v29, %v1118_v28 }
 0x9b9   : > { %v1121_v25 = vadd.f32 1e-12, %v1119_v30 }
 0x9bb   : > { %2379 = vrsqrt.f32 %v1121_v25 }
 0x9c8   : > { %v2380_v35 = vpop.eup %2379 }
 0x9c9   : > { %v1123_v36 = vmul.f32 %v2380_v35, %v1120_v33 }
 0x9cb   : > { %v1128_v41 = vmul.f32 %v1127_v34, %v1123_v36  ;;  %v1548_v34 = vrot.slane %v3024_v44, %v871_v12  ;;  %v2358_v12 = vld [vmem:[%s3172_s5 + $0x10] sm:$0xff]  }
 0x9cd   : > { %v3017_v42 = vadd.f32 %v1132_v40, %v1128_v41 }
 0x9cf   : > { %v1136_v43 = vpack.c.bf16 %v3017_v42, %v3017_v42 }
 0x9d1   : > { %2192 = vmatmul.mubr.msk.bf16.vlgmr.msra.gmra.mxu0 %vm426_vm0, %v1136_v43 }
 0x9d2   : > { %2197 = vmatprep.mubr.msk.f32.mxu0 %vm2619_vm1, %v2618_v5 }
 0xa91   : > { %v1195_v46 = vpop.f32.mrf.mxu0 }
 0xa92   : > { %v1196_v47 = vadd.f32 %v1195_v46, %v1145_v45 }
 0xa93   : > { %v2193_v48 = vpop.f32.mrf.mxu0 }
 0xa94   : > { %1204 = vrot.lane.b32.xlu0 %v1196_v47, %s2621_s18  ;;  %1202 = vrot.lane.b32.xlu1 %v1196_v47, %s2620_s20 }
 0xa95   : > { %v1198_v27 = vpop.f32.mrf.mxu0 }
 0xa96   : > { %v2357_v27 = vld [vmem:[%s3172_s5 + $0x18] sm:$0xff]  }
 0xa97   : > { %v2194_v49 = vpop.f32.mrf.mxu0 }
 0xb06   : > { %v1205_v50 = vpop.permute.xlu0 %1204  ;;  %v1203_v51 = vpop.permute.xlu1 %1202 }
 0xb07   : > { %2196 = vmatpush3.xpose.msk.msra.mxu0 %vm523_vm2, %v1205_v50  ;;  %1280 = vrot.lane.b32.xlu1 %v1203_v51, %s2621_s18  ;;  %s2081_s18 = sshll.u32 %s2696_s13, 4  ;;  %s2537_s13 = scalar_lea.vmem %s2536_s28, 32 }
 0xb08   : > { %2200 = vmatprep.subr.mxu0 %v2618_v5  ;;  %s3130_s14 = scalar_lea.hbm %s3176_s9, %s2081_s18 }
 0xb0a   : > { %2198 = vmatmul.mubr.msk.f32.vlgmr.msra.gmra.mxu0 %vm523_vm2, %v1196_v47 }
 0xb0b   : > { %2202 = vmatprep.mubr.msk.f32.mxu0 %vm2619_vm1, %v2618_v5 }
 0xb79   : > { %v1281_v16 = vpop.permute.xlu1 %1280 }
 0xb7a   : > { %2201 = vmatpush3.xpose.msk.msra.mxu0 %vm523_vm2, %v1281_v16 }
 0xb7b   : > { %2210 = vmatprep.subr.mxu0 %v2618_v5 }
 0xb7d   : > { %2203 = vmatmul.mubr.msk.f32.vlgmr.msra.gmra.mxu0 %vm523_vm2, %v1203_v51 }
 0xb7e   : > { %2212 = vmatprep.mubr.msk.f32.mxu0 %vm2619_vm1, %v2618_v5 }
 0xbca   : > { %v1276_v52 = vpop.f32.mrf.mxu0 }
 0xbcb   : > { %v1356_v53 = vmul.f32 0.25, %v1276_v52 }
 0xbcc   : > { %v2199_v54 = vpop.f32.mrf.mxu0 }
 0xbcd   : > { %v1358_v55 = vadd.f32 %v2917_v38, %v1356_v53 }
 0xbcf   : > { %v1360_v56 = vsel %vm684_vm3, %v1358_v55, -inf }
 0xbd0   : > { %1361 = vmax.xlane.f32.xlu0 %v1360_v56 }
 0xbe6   : > { %1458 = vrot.lane.b32.xlu0 %v1203_v51, %s2622_s19 }
 0xc3d   : > { %v1352_v57 = vpop.f32.mrf.mxu0 }
 0xc3e   : > { %v1357_v58 = vmul.f32 0.25, %v1352_v57 }
 0xc3f   : > { %v2204_v59 = vpop.f32.mrf.mxu0 }
 0xc40   : > { %v1359_v60 = vadd.f32 %v2917_v38, %v1357_v58  ;;  %v1628_v58 = vrot.slane %v3024_v44, %v951_v39  ;;  %v2361_v39 = vld [vmem:[%s3173_s6 + $0x28] sm:$0xff]  }
 0xc42   : > { %v1363_v61 = vsel %vm684_vm3, %v1359_v60, -inf }
 0xc43   : > { %1364 = vmax.xlane.f32.xlu1 %v1363_v61 }
 0xc59   : > { %v1362_v62 = vpop.xlane.xlu0 %1361 }
 0xc5a   : > { %v1366_v0 = vsub.f32 %v1358_v55, %v1362_v62  ;;  %v1623_v55 = vrot.slane %v3024_v44, %v946_v37  ;;  %v2359_v62 = vld [vmem:[%s3173_s6 + $0x38] sm:$0xff]   ;;  %v2360_v37 = vld [vmem:[%s3173_s6 + $0x30] sm:$0xff]  }
 0xc5c   : > { %v1368_v3 = vmul.f32 1.442695, %v1366_v0  ;;  %v1639_v0 = vrot.slane %v3024_v44, %v2885_v18  ;;  %v1717_v18 = vrot.slane %v3024_v44, %v1038_v4 }
 0xc5d   : > { %v1459_v63 = vpop.permute.xlu0 %1458 }
 0xc5e   : > { %2211 = vmatpush3.msra.mxu0 %v1459_v63  ;;  %v2362_v63 = vld [vmem:[%s3173_s6 + $0x20] sm:$0xff]  }
 0xc5f   : > { %2223 = vmatprep.subr.bf16.mxu0 %v2618_v5 }
 0xccc   : > { %v1365_v1 = vpop.xlane.xlu1 %1364 }
 0xccd   : > { %v1367_v2 = vsub.f32 %v1359_v60, %v1365_v1 }
 0xccf   : > { %v1370_v6 = vmul.f32 1.442695, %v1367_v2 }
 0xcd1   : > { %2381 = vpow2.f32 %v1370_v6 }
 0xcd2   : > { %2383 = vpow2.f32 %v1368_v3 }
 0xcde   : > { %v2382_v7 = vpop.eup %2381 }
 0xcdf   : > { %v1375_v8 = vsel %vm684_vm3, %v2382_v7, 0.0  ;;  %v2384_v9 = vpop.eup %2383 }
 0xce0   : > { %1376 = vadd.xlane.f32.xlu1 %v1375_v8  ;;  %v1372_v38 = vsel %vm684_vm3, %v2384_v9, 0.0 }
 0xce4   : > { %1373 = vadd.xlane.f32.xlu1 %v1372_v38 }
 0xcf5   : > { %1382 = vrot.lane.b32.xlu1 %v1196_v47, %s2622_s19  ;;  %s421_s19 = scalar_lea.vmem [#allocation11], %s2839_s24 }
 0xcf6   : > { %s1889_s25 = sshll.u32 %s421_s19, 4  ;;  %s1890_s25 = int_to_ptr.vmem [resolvable:$true] %s1889_s25 }
 0xcf7   : > { %s2531_s2 = scalar_lea.vmem %s1890_s25, 16  ;;  %p2538_p1 = scmp.lt.s32.totalorder %s1890_s25, %s2536_s28 }
 0xcf8   : > { %p2532_p7 = scmp.ne.s32.totalorder %s1890_s25, %s2531_s2  ;;  %p2539_p3 = scmp.lt.s32.totalorder %s2537_s13, %s2531_s2 }
 0xcfa   : > { %p2533_p13 = pnand %p2532_p7, %p3202_p10  ;;  %p2540_p9 = por %p2539_p3, %p2538_p1 }
 0xcfc   : > { %p2534_p0 = pneg %p2533_p13 }
 0xcfe   : > { %p2541_p5 = pnand %p2540_p9, %p2534_p0 }
 0xd69   : > { %v1377_v10 = vpop.xlane.xlu1 %1376 }
 0xd6a   : > { %2385 = vrcp.f32 %v1377_v10 }
 0xd6d   : > { %v1374_v11 = vpop.xlane.xlu1 %1373 }
 0xd6e   : > { %2387 = vrcp.f32 %v1374_v11 }
 0xd71   : > { %v1383_v13 = vpop.permute.xlu1 %1382 }
 0xd72   : > { %2206 = vmatpush3.msra.mxu1 %v1383_v13 }
 0xd73   : > { %2215 = vmatprep.subr.bf16.mxu1 %v2618_v5 }
 0xd77   : > { %v2386_v14 = vpop.eup %2385 }
 0xd78   : > { %v1381_v19 = vmul.f32 %v2386_v14, %v2382_v7 }
 0xd7a   : > { %2213 = vmatmul.mubr.msk.f32.vlgmr.msra.gmra.mxu0 %vm684_vm3, %v1381_v19 }
 0xd7b   : > { %v2388_v20 = vpop.eup %2387  ;;  %2227 = vmatprep.mubr.msk.bf16.mxu0 %vm2619_vm1, %v2618_v5  ;;  %2224 = vmatpush3.bf16.msra.mxu0 %v2357_v27 }
 0xd7c   : > { %v1380_v21 = vmul.f32 %v2388_v20, %v2384_v9  ;;  %2225 = vmatprep.subr.bf16.mxu0 %v2618_v5 }
 0xd7e   : > { %2208 = vmatmul.mubr.msk.f32.vlgmr.msra.gmra.mxu1 %vm684_vm3, %v1380_v21 }
 0xd7f   : > { %2219 = vmatprep.mubr.msk.bf16.mxu1 %vm2619_vm1, %v2618_v5  ;;  %2216 = vmatpush3.bf16.msra.mxu1 %v2355_v22 }
 0xd80   : > { %2217 = vmatprep.subr.bf16.mxu1 %v2618_v5  ;;  %2226 = vmatpush3.bf16.msra.mxu0 %v2358_v12 }
 0xd81   : > { %2243 = vmatprep.subr.bf16.mxu0 %v2618_v5 }
 0xd83   : > { %2218 = vmatpush3.bf16.msra.mxu1 %v2356_v23 }
 0xd84   : > { %2231 = vmatprep.subr.bf16.mxu1 %v2618_v5 }
 0xe3a   : > { %v1530_v24 = vpop.f32.mrf.mxu0 }
 0xe3b   : > { %1535 = vrot.lane.b32.xlu0 %v1530_v24, %s2623_s26 }
 0xe3c   : > { %v2214_v26 = vpop.f32.mrf.mxu0 }
 0xe3e   : > { %v1454_v28 = vpop.f32.mrf.mxu1 }
 0xe40   : > { %v2209_v29 = vpop.f32.mrf.mxu1 }
 0xead   : > { %v1536_v30 = vpop.permute.xlu0 %1535 }
 0xeae   : > { %v1538_v25 = vsel %vm523_vm2, %v1454_v28, %v1536_v30 }
 0xeaf   : > { %v1539_v33 = vpack.c.bf16 %v1538_v25, %v1538_v25 }
 0xeb1   : > { %2220 = vmatmul.mubr.msk.bf16.vlgmr.msra.gmra.mxu1 %vm426_vm0, %v1539_v33 }
 0xeb2   : > { %2239 = vmatprep.mubr.msk.bf16.mxu1 %vm2619_vm1, %v2618_v5  ;;  %2232 = vmatpush3.bf16.msra.mxu1 %v2359_v62 }
 0xeb3   : > { %2233 = vmatprep.subr.bf16.mxu1 %v2618_v5 }
 0xeb6   : > { %2234 = vmatpush3.bf16.msra.mxu1 %v2360_v37 }
 0xeb7   : > { %2235 = vmatprep.subr.bf16.mxu1 %v2618_v5 }
 0xeba   : > { %2236 = vmatpush3.bf16.msra.mxu1 %v2361_v39 }
 0xebb   : > { %2237 = vmatprep.subr.bf16.mxu1 %v2618_v5 }
 0xebe   : > { %2238 = vmatpush3.bf16.msra.mxu1 %v2362_v63 }
 0xf71   : > { %v1598_v35 = vpop.f32.mrf.mxu1 }
 0xf72   : > { %v1599_v36 = vadd.f32 %v1598_v35, %v1548_v34  ;;  %v2363_v34 = vld [vmem:[#allocation10 + $0x8] sm:$0xff]   ;;  %v2364_v35 = vld [vmem:[#allocation10] sm:$0xff]  }
 0xf73   : > { %v2221_v40 = vpop.f32.mrf.mxu1 }
 0xf74   : > { %v1604_v41 = vadd.f32 %v1599_v36, %v3017_v42 }
 0xf75   : > { %v1601_v43 = vpop.f32.mrf.mxu1 }
 0xf76   : > { %v1605_v45 = vsel %vm426_vm0, %v1604_v41, 0.0  ;;  %v1609_v46 = vmul.f32 %v1604_v41, %v1604_v41 }
 0xf77   : > { %1606 = vadd.xlane.f32.xlu1 %v1605_v45  ;;  %v2222_v47 = vpop.f32.mrf.mxu1 }
 0xf78   : > { %v1610_v48 = vsel %vm426_vm0, %v1609_v46, 0.0 }
 0xf79   : > { %1611 = vadd.xlane.f32.xlu0 %v1610_v48  ;;  %v1804_v48 = vrot.slane %v3024_v44, %v1126_v31 }
0x1000   : > { %v1607_v42 = vpop.xlane.xlu1 %1606 }
0x1001   : > { %v1608_v49 = vmul.f32 0.03125, %v1607_v42 }
0x1002   : > { %v1612_v50 = vpop.xlane.xlu0 %1611 }
0x1003   : > { %v1614_v51 = vmul.f32 %v1608_v49, %v1608_v49  ;;  %v1613_v16 = vmul.f32 0.03125, %v1612_v50  ;;  %v1616_v54 = vsub.f32 %v1604_v41, %v1608_v49 }
0x1005   : > { %v1615_v52 = vsub.f32 %v1613_v16, %v1614_v51  ;;  %v1829_v51 = vrot.slane %v2882_v17, 2 }
0x1007   : > { %v1617_v53 = vadd.f32 1e-12, %v1615_v52 }
0x1009   : > { %2389 = vrsqrt.f32 %v1617_v53 }
0x1016   : > { %v2390_v56 = vpop.eup %2389 }
0x1017   : > { %v1619_v57 = vmul.f32 %v2390_v56, %v1616_v54 }
0x1019   : > { %v1624_v59 = vmul.f32 %v1623_v55, %v1619_v57 }
0x101b   : > { %v1629_v60 = vadd.f32 %v1628_v58, %v1624_v59 }
0x101d   : > { %v1630_v61 = vpack.c.bf16 %v1629_v60, %v1629_v60 }
0x101f   : > { %2228 = vmatmul.mubr.msk.bf16.vlgmr.msra.gmra.mxu0 %vm426_vm0, %v1630_v61 }
0x1020   : > { %2247 = vmatprep.mubr.msk.bf16.mxu0 %vm2619_vm1, %v2618_v5  ;;  %2244 = vmatpush3.bf16.msra.mxu0 %v2363_v34 }
0x1021   : > { %2245 = vmatprep.subr.bf16.mxu0 %v2618_v5  ;;  %v1809_v5 = vrot.slane %v3024_v44, %v1131_v32 }
0x1024   : > { %2246 = vmatpush3.bf16.msra.mxu0 %v2364_v35 }
0x10df   : > { %v1689_v1 = vpop.f32.mrf.mxu0 }
0x10e0   : > { %v1690_v2 = vadd.f32 %v1689_v1, %v1639_v0 }
0x10e1   : > { %v2229_v3 = vpop.f32.mrf.mxu0 }
0x10e2   : > { %v1695_v6 = vmul.f32 %v1690_v2, %v1690_v2 }
0x10e3   : > { %v1692_v7 = vpop.f32.mrf.mxu0 }
0x10e4   : > { %v1696_v8 = vmul.f32 %v1695_v6, %v1690_v2 }
0x10e5   : > { %v2230_v9 = vpop.f32.mrf.mxu0 }
0x10e6   : > { %v1697_v38 = vmul.f32 0.044715, %v1696_v8 }
0x10e8   : > { %v1698_v10 = vadd.f32 %v1697_v38, %v1690_v2 }
0x10ea   : > { %v1699_v11 = vmul.f32 0.7978846, %v1698_v10 }
0x10ec   : > { %2391 = vtanh.f32 %v1699_v11 }
0x10f9   : > { %v2392_v13 = vpop.eup %2391 }
0x10fa   : > { %v1701_v14 = vadd.f32 1.0, %v2392_v13 }
0x10fc   : > { %v1702_v19 = vmul.f32 0.5, %v1701_v14 }
0x10fe   : > { %v1703_v20 = vmul.f32 %v1702_v19, %v1690_v2 }
0x1100   : > { %v1704_v21 = vpack.c.bf16 %v1703_v20, %v1703_v20 }
0x1102   : > { %2240 = vmatmul.mubr.msk.bf16.vlgmr.msra.gmra.mxu1 %vm1064_vm4, %v1704_v21 }
0x11c2   : > { %v1779_v22 = vpop.f32.mrf.mxu1 }
0x11c3   : > { %v1780_v23 = vadd.f32 %v1779_v22, %v1717_v18 }
0x11c4   : > { %v2241_v24 = vpop.f32.mrf.mxu1 }
0x11c5   : > { %v1785_v26 = vadd.f32 %v1780_v23, %v1629_v60 }
0x11c6   : > { %v1782_v28 = vpop.f32.mrf.mxu1 }
0x11c7   : > { %v1786_v29 = vsel %vm426_vm0, %v1785_v26, 0.0  ;;  %v1790_v30 = vmul.f32 %v1785_v26, %v1785_v26 }
0x11c8   : > { %1787 = vadd.xlane.f32.xlu0 %v1786_v29  ;;  %v2242_v25 = vpop.f32.mrf.mxu1 }
0x11c9   : > { %v1791_v33 = vsel %vm426_vm0, %v1790_v30, 0.0 }
0x11ca   : > { %1792 = vadd.xlane.f32.xlu1 %v1791_v33 }
0x1251   : > { %v1788_v4 = vpop.xlane.xlu0 %1787 }
0x1252   : > { %v1789_v36 = vmul.f32 0.03125, %v1788_v4 }
0x1253   : > { %v1793_v40 = vpop.xlane.xlu1 %1792 }
0x1254   : > { %v1795_v41 = vmul.f32 %v1789_v36, %v1789_v36  ;;  %v1794_v43 = vmul.f32 0.03125, %v1793_v40  ;;  %v1797_v47 = vsub.f32 %v1785_v26, %v1789_v36 }
0x1256   : > { %v1796_v45 = vsub.f32 %v1794_v43, %v1795_v41 }
0x1258   : > { %v1798_v46 = vadd.f32 1e-12, %v1796_v45 }
0x125a   : > { %2393 = vrsqrt.f32 %v1798_v46 }
0x1267   : > { %v2394_v27 = vpop.eup %2393 }
0x1268   : > { %v1800_v12 = vmul.f32 %v2394_v27, %v1797_v47 }
0x126a   : > { %v1805_v42 = vmul.f32 %v1804_v48, %v1800_v12 }
0x126c   : > { %v1810_v49 = vadd.f32 %v1809_v5, %v1805_v42 }
0x126e   : > { %v1811_v50 = vpack.c.bf16 %v1810_v49, %v1810_v49 }
0x1270   : > { %2248 = vmatmul.mubr.msk.bf16.vlgmr.msra.gmra.mxu0 %vm426_vm0, %v1811_v50 }
0x1330   : > { %v1868_v16 = vpop.f32.mrf.mxu0 }
0x1331   : > { %v1869_v52 = vadd.f32 %v1868_v16, %v1829_v51 }
0x1332   : > { %v2249_v53 = vpop.f32.mrf.mxu0 }
0x1333   : > { %2395 = vtanh.f32 %v1869_v52 }
0x1334   : > { %v1871_v31 = vpop.f32.mrf.mxu0 }
0x1336   : > { %v2250_v54 = vpop.f32.mrf.mxu0 }
0x1340   : > { %v2396_v15 = vpop.eup %2395 }
0x1341   : > { %1875 = vst [vmem:[%s421_s19] sm:$0x1] %v2396_v15 }
0x1342   : > { %2544 = shalt.err (!%p2541_p5)
}
0x1343   : > { %s2545_s17 = scalar_lea.hbm %s3130_s14, 16  ;;  %s2549_s15 = scalar_lea.hbm %s3176_s9, 32 }
0x1344   : > { %p2546_p4 = scmp.ne.s32.totalorder %s3130_s14, %s2545_s17  ;;  %p2550_p6 = scmp.lt.s32.totalorder %s3130_s14, %s3176_s9 }
0x1345   : > { %p2551_p8 = scmp.lt.s32.totalorder %s2549_s15, %s2545_s17 }
0x1346   : > { %p2547_p2 = pnand %p2546_p4, %p3202_p10 }
0x1347   : > { %p2552_p12 = por %p2551_p8, %p2550_p6 }
0x1348   : > { %p2548_p11 = pneg %p2547_p2 }
0x134a   : > { %p2553_p7 = pnand %p2552_p12, %p2548_p11 }
0x134c   : > { %2556 = shalt.err (!%p2553_p7)
}
0x134d   : > { %2267 = dma.vmem_to_hbm [thread:$0]  (%p3202_p10), %s1890_s25, 16, %s3130_s14, %s1877_s23  }
0x134e PF: > { %s1901_s18 = sand.u32 1, %s2595_s30   ;;  %p3203_p13 = scmp.ne.s32.totalorder %s3185_s16, 0 }
0x134f   : > { %p3204_p0 = scmp.ge.s32.totalorder %s2607_s12, 2  ;;  %s1902_s19 = scalar_lea.sflag [#allocation4], %s1901_s18 }
0x1351   : > { %p2287_p1 = pnand %p3204_p0, %p3203_p13 }
0x1353   : > { %p2288_p3 = pneg %p2287_p1 }
0x1355   : > { %2590 = dma.done.wait (%p2288_p3), %s1902_s19, 16  }
0x1356   : > { %2592 = vsyncadd (%p2288_p3), %s1902_s19, 4294967280  ;;  %s3205_s26 = sld [smem:[#allocation17_spill]]  ;;  %p26_p9 = scmp.ge.s32.totalorder %s2755_s27, 4  }
0x1357   : > { %s3206_s30 = smov %s2599_s10  ;;  %s3207_s10 = smov %s2603_s11 }
0x1358   : > { %s3209_s12 = smov %s2755_s27  ;;  %28 = sbr.rel (!%p26_p9) target bundleno = 12 (0xc), region = 131 }
0x135c   : > { %s3208_s11 = smov %s3205_s26 }
0x135d   :  { %1906 = vsyncpa [#allocation3], 1 }
0x135e   :  { %1908 = vsyncpa [#allocation3 + $0x1], 1 }
0x135f   :  { %1909 = vsyncpa [#allocation6], 1 }
0x1360   :  { %1911 = vsyncpa [#allocation6 + $0x1], 1 }
0x1361   :  { %1912 = vsyncpa [#allocation9], 1 }
0x1362   :  { %1913 = vsyncpa [#allocation4], 1 }
0x1363   :  { %1915 = vsyncpa [#allocation4 + $0x1], 1 }

</bundles_post_ra>
